<compile_context>
chip_gen: v6e
topology: v6e:2x2x1
jax: 0.10.0
libtpu: 0.0.40
codegen_flags: <defaults>
</compile_context>

<pallas_src>
import functools

import jax
import jax.numpy as jnp
from jax.experimental import pallas as pl
from jax.experimental.pallas import tpu as pltpu


# ----------------------------------------------------------------------------
# Pallas kernel: entire forward pass in ONE invocation.
# ----------------------------------------------------------------------------
def lstm_tagger_kernel(x_ref, mask_ref, wih_ref, whh_ref, b_ref,
                       wtag_ref, btag_ref, out_ref):
    B, T, E = x_ref.shape
    H = whh_ref.shape[0]

    wih = wih_ref[...]          # (E, 4H)
    whh = whh_ref[...]          # (H, 4H)
    bias = b_ref[...]           # (1, 4H)  = b_ih + b_hh

    x = x_ref[...]              # (B, T, E), batch-major

    # ---- 1. Hoisted input projection: all timesteps at once, off the serial path.
    #         One (T,E)@(E,4H) matmul per batch row; bias added once (not per step).
    proj = [jnp.dot(x[b], wih, preferred_element_type=jnp.float32) + bias
            for b in range(B)]                      # B x (T, 4H)
    xw = jnp.stack(proj, axis=1)                    # (T, B, 4H), time-major for the loop

    # ---- 2. Serial recurrence, fully unrolled (T static & small).
    #         h_0 = c_0 = 0 (init_hidden in the PyTorch module).
    h = jnp.zeros((B, H), jnp.float32)
    c = jnp.zeros((B, H), jnp.float32)
    hs = []
    for t in range(T):
        gates = xw[t] + jnp.dot(h, whh, preferred_element_type=jnp.float32)  # (B, 4H)
        i_g = jax.nn.sigmoid(gates[:, 0 * H:1 * H])
        f_g = jax.nn.sigmoid(gates[:, 1 * H:2 * H])
        g_g = jnp.tanh(gates[:, 2 * H:3 * H])
        o_g = jax.nn.sigmoid(gates[:, 3 * H:4 * H])
        c = f_g * c + i_g * g_g
        h = o_g * jnp.tanh(c)
        hs.append(h)
    h_all = jnp.stack(hs, axis=1)                   # (B, T, H), batch-major

    # ---- 3. Batched epilogue (off the serial path):
    #         masked_fill(~mask, -1e18) -> hidden2tag -> log_softmax, stored batch-major.
    #         NOTE: the -1e18 fill matches the PyTorch module exactly; callers discard
    #         pad positions, and at these sizes the poisoned logits stay within f32 range.
    m = mask_ref[...]                               # (B, T, 1) float {0., 1.}
    wtag = wtag_ref[...]                            # (H, Tg)
    btag = btag_ref[...]                            # (1, Tg)
    for b in range(B):
        h_masked = jnp.where(m[b] > 0.5, h_all[b], jnp.float32(-1e18))       # (T, H)
        logits = (jnp.dot(h_masked, wtag, preferred_element_type=jnp.float32)
                  + btag)                                                     # (T, Tg)
        mx = jnp.max(logits, axis=-1, keepdims=True)
        s = logits - mx
        lse = jnp.log(jnp.sum(jnp.exp(s), axis=-1, keepdims=True))
        out_ref[b] = s - lse


# ----------------------------------------------------------------------------
# Wrapper
# ----------------------------------------------------------------------------
@functools.partial(jax.jit, static_argnames=("pad_idx",))
def lstm_tagger_forward(sentence, params, pad_idx=0):
    """sentence: (B, T) int32 token ids.  Returns (B, T, Tg) log-probs."""
    emb, w_ih, w_hh, b_ih, b_hh, w_tag, b_tag = (
        params["emb"], params["w_ih"], params["w_hh"], params["b_ih"],
        params["b_hh"], params["w_tag"], params["b_tag"])

    B, T = sentence.shape
    E = emb.shape[1]
    H = w_hh.shape[1]
    Tg = w_tag.shape[0]

    # Embedding lookup (gather) stays as plain-JAX glue; output is batch-major,
    # so no activation transposes on either side of the kernel.
    embeds = jnp.take(emb, sentence, axis=0).astype(jnp.float32)      # (B, T, E)
    mask = (sentence != pad_idx).astype(jnp.float32)[:, :, None]      # (B, T, 1)

    # Pre-transpose the (tiny) weights once so the kernel does row-major matmuls.
    wih_t = jnp.transpose(w_ih).astype(jnp.float32)                   # (E, 4H)
    whh_t = jnp.transpose(w_hh).astype(jnp.float32)                   # (H, 4H)
    b_all = (b_ih + b_hh).reshape(1, 4 * H).astype(jnp.float32)       # (1, 4H)
    wtag_t = jnp.transpose(w_tag).astype(jnp.float32)                 # (H, Tg)
    btag = b_tag.reshape(1, Tg).astype(jnp.float32)                   # (1, Tg)

    out = pl.pallas_call(
        lstm_tagger_kernel,
        out_shape=jax.ShapeDtypeStruct((B, T, Tg), jnp.float32),
        grid=(1,),                                  # single invocation; recurrence is in-kernel
        in_specs=[
            pl.BlockSpec((B, T, E), lambda i: (0, 0, 0)),    # embeddings (batch-major)
            pl.BlockSpec((B, T, 1), lambda i: (0, 0, 0)),    # pad mask
            pl.BlockSpec((E, 4 * H), lambda i: (0, 0)),      # W_ih^T
            pl.BlockSpec((H, 4 * H), lambda i: (0, 0)),      # W_hh^T
            pl.BlockSpec((1, 4 * H), lambda i: (0, 0)),      # b_ih + b_hh
            pl.BlockSpec((H, Tg), lambda i: (0, 0)),         # W_tag^T
            pl.BlockSpec((1, Tg), lambda i: (0, 0)),         # b_tag
        ],
        out_specs=pl.BlockSpec((B, T, Tg), lambda i: (0, 0, 0)),
        compiler_params=pltpu.CompilerParams(
            dimension_semantics=("arbitrary",)),
    )(embeds, mask, wih_t, whh_t, b_all, wtag_t, btag)

    return out                                                        # (B, T, Tg)


# ----------------------------------------------------------------------------
# Pure-JAX reference (same math) for a sanity check on non-pad positions.
# ----------------------------------------------------------------------------
def reference_forward(sentence, params, pad_idx=0):
    emb, w_ih, w_hh, b_ih, b_hh, w_tag, b_tag = (
        params["emb"], params["w_ih"], params["w_hh"], params["b_ih"],
        params["b_hh"], params["w_tag"], params["b_tag"])
    B, T = sentence.shape
    H = w_hh.shape[1]
    embeds = jnp.take(emb, sentence, axis=0)                 # (B, T, E)
    mask = sentence != pad_idx

    def step(carry, x_t):
        h, c = carry
        gates = (x_t @ w_ih.T + h @ w_hh.T + b_ih + b_hh)
        i = jax.nn.sigmoid(gates[:, 0 * H:1 * H])
        f = jax.nn.sigmoid(gates[:, 1 * H:2 * H])
        g = jnp.tanh(gates[:, 2 * H:3 * H])
        o = jax.nn.sigmoid(gates[:, 3 * H:4 * H])
        c = f * c + i * g
        h = o * jnp.tanh(c)
        return (h, c), h

    h0 = jnp.zeros((B, H), jnp.float32)
    (_, _), hs = jax.lax.scan(step, (h0, h0), jnp.transpose(embeds, (1, 0, 2)))
    lstm_out = jnp.transpose(hs, (1, 0, 2))                  # (B, T, H)
    lstm_out = jnp.where(mask[:, :, None], lstm_out, jnp.float32(-1e18))
    logits = lstm_out @ w_tag.T + b_tag
    return jax.nn.log_softmax(logits, axis=2)


# ----------------------------------------------------------------------------
if __name__ == "__main__":
    # Small shapes consistent with the module:
    #   vocab V=16, embedding dim E=32 (pretrained vector_size),
    #   hidden_dim H=32, tagset_size Tg=8, batch B=2, seq_len T=8, PAD index 0.
    V, E, H, Tg = 16, 32, 32, 8
    B, T = 2, 8
    PAD_IDX = 0

    key = jax.random.PRNGKey(0)
    k_emb, k_ih, k_hh, k_bih, k_bhh, k_wt, k_bt, k_sent = jax.random.split(key, 8)

    params = {
        "emb":   0.5 * jax.random.normal(k_emb, (V, E), jnp.float32),
        "w_ih":  0.1 * jax.random.normal(k_ih, (4 * H, E), jnp.float32),
        "w_hh":  0.1 * jax.random.normal(k_hh, (4 * H, H), jnp.float32),
        "b_ih":  0.1 * jax.random.normal(k_bih, (4 * H,), jnp.float32),
        "b_hh":  0.1 * jax.random.normal(k_bhh, (4 * H,), jnp.float32),
        "w_tag": 0.1 * jax.random.normal(k_wt, (Tg, H), jnp.float32),
        "b_tag": 0.1 * jax.random.normal(k_bt, (Tg,), jnp.float32),
    }

    # Deterministic token ids in [1, V), with trailing PADs (index 0).
    sentence = jax.random.randint(k_sent, (B, T), 1, V, dtype=jnp.int32)
    pad_pattern = jnp.array([[1] * 5 + [0] * 3,
                             [1] * 7 + [0] * 1], dtype=jnp.int32)
    sentence = sentence * pad_pattern          # zeros are [PAD]

    scores = lstm_tagger_forward(sentence, params, pad_idx=PAD_IDX)
    scores = jax.block_until_ready(scores)
    assert scores.shape == (B, T, Tg)

    # Sanity check against pure-JAX reference on non-pad positions
    # (pad positions carry the -1e18 poison by design, as in the PyTorch module).
    ref = reference_forward(sentence, params, pad_idx=PAD_IDX)
    valid = (sentence != PAD_IDX)[:, :, None]
    diff = jnp.max(jnp.abs(jnp.where(valid, scores - ref, 0.0)))
    assert float(diff) < 2e-2, f"mismatch vs reference: {float(diff)}"

    print("KERNEL_OK")
</pallas_src>

<mosaic_0001>
module attributes {stable_mosaic.version = 11 : i64} {
  func.func @lstm_tagger_kernel(%arg0: i32, %arg1: memref<2x8x32xf32, #tpu.memory_space<vmem>>, %arg2: memref<2x8x1xf32, #tpu.memory_space<vmem>>, %arg3: memref<32x128xf32, #tpu.memory_space<vmem>>, %arg4: memref<32x128xf32, #tpu.memory_space<vmem>>, %arg5: memref<1x128xf32, #tpu.memory_space<vmem>>, %arg6: memref<32x8xf32, #tpu.memory_space<vmem>>, %arg7: memref<1x8xf32, #tpu.memory_space<vmem>>, %arg8: memref<2x8x8xf32, #tpu.memory_space<vmem>>) attributes {dimension_semantics = [#tpu.dimension_semantics<arbitrary>], iteration_bounds = array<i64: 1>, scalar_prefetch = 0 : i64, scratch_operands = 0 : i64, tpu.core_type = #tpu.core_type<tc>, window_params = [{pipeline_mode = #tpu.pipeline_mode<synchronous>, transform_indices = @transform_0, window_bounds = array<i64: 2, 8, 32>}, {pipeline_mode = #tpu.pipeline_mode<synchronous>, transform_indices = @transform_1, window_bounds = array<i64: 2, 8, 1>}, {pipeline_mode = #tpu.pipeline_mode<synchronous>, transform_indices = @transform_2, window_bounds = array<i64: 32, 128>}, {pipeline_mode = #tpu.pipeline_mode<synchronous>, transform_indices = @transform_3, window_bounds = array<i64: 32, 128>}, {pipeline_mode = #tpu.pipeline_mode<synchronous>, transform_indices = @transform_4, window_bounds = array<i64: 1, 128>}, {pipeline_mode = #tpu.pipeline_mode<synchronous>, transform_indices = @transform_5, window_bounds = array<i64: 32, 8>}, {pipeline_mode = #tpu.pipeline_mode<synchronous>, transform_indices = @transform_6, window_bounds = array<i64: 1, 8>}, {pipeline_mode = #tpu.pipeline_mode<synchronous>, transform_indices = @transform_7, window_bounds = array<i64: 2, 8, 8>}]} {
    %c0 = arith.constant 0 : index
    %c0_0 = arith.constant 0 : index
    %0 = vector.load %arg3[%c0, %c0_0] : memref<32x128xf32, #tpu.memory_space<vmem>>, vector<32x128xf32>
    %c0_1 = arith.constant 0 : index
    %c0_2 = arith.constant 0 : index
    %1 = vector.load %arg4[%c0_1, %c0_2] : memref<32x128xf32, #tpu.memory_space<vmem>>, vector<32x128xf32>
    %c0_3 = arith.constant 0 : index
    %c0_4 = arith.constant 0 : index
    %2 = vector.load %arg5[%c0_3, %c0_4] : memref<1x128xf32, #tpu.memory_space<vmem>>, vector<1x128xf32>
    %c0_5 = arith.constant 0 : index
    %c0_6 = arith.constant 0 : index
    %c0_7 = arith.constant 0 : index
    %3 = vector.load %arg1[%c0_5, %c0_6, %c0_7] : memref<2x8x32xf32, #tpu.memory_space<vmem>>, vector<2x8x32xf32>
    %4 = vector.extract_strided_slice %3 {offsets = [0, 0, 0], sizes = [1, 8, 32], strides = [1, 1, 1]} : vector<2x8x32xf32> to vector<1x8x32xf32>
    %5 = vector.shape_cast %4 : vector<1x8x32xf32> to vector<8x32xf32>
    %cst = arith.constant dense<0.000000e+00> : vector<8x128xf32>
    %6 = tpu.matmul %5, %0, %cst {dimension_numbers = #tpu.dot_dimension_numbers<[1], [0], [0], [1], [0, 0, 1, 1], [], []>} : vector<8x32xf32>, vector<32x128xf32>, vector<8x128xf32> -> vector<8x128xf32>
    %7 = vector.broadcast %2 : vector<1x128xf32> to vector<8x128xf32>
    %8 = arith.addf %6, %7 : vector<8x128xf32>
    %9 = vector.extract_strided_slice %3 {offsets = [1, 0, 0], sizes = [1, 8, 32], strides = [1, 1, 1]} : vector<2x8x32xf32> to vector<1x8x32xf32>
    %10 = vector.shape_cast %9 : vector<1x8x32xf32> to vector<8x32xf32>
    %cst_8 = arith.constant dense<0.000000e+00> : vector<8x128xf32>
    %11 = tpu.matmul %10, %0, %cst_8 {dimension_numbers = #tpu.dot_dimension_numbers<[1], [0], [0], [1], [0, 0, 1, 1], [], []>} : vector<8x32xf32>, vector<32x128xf32>, vector<8x128xf32> -> vector<8x128xf32>
    %12 = vector.broadcast %2 : vector<1x128xf32> to vector<8x128xf32>
    %13 = arith.addf %11, %12 : vector<8x128xf32>
    %14 = vector.shape_cast %8 : vector<8x128xf32> to vector<8x1x128xf32>
    %15 = vector.shape_cast %13 : vector<8x128xf32> to vector<8x1x128xf32>
    %16 = tpu.concatenate %14, %15 in 1 : vector<8x1x128xf32>, vector<8x1x128xf32> -> vector<8x2x128xf32>
    %cst_9 = arith.constant 0.000000e+00 : f32
    %17 = vector.broadcast %cst_9 : f32 to vector<2x32xf32>
    %cst_10 = arith.constant 0.000000e+00 : f32
    %18 = vector.broadcast %cst_10 : f32 to vector<2x32xf32>
    %19 = vector.extract_strided_slice %16 {offsets = [0, 0, 0], sizes = [1, 2, 128], strides = [1, 1, 1]} : vector<8x2x128xf32> to vector<1x2x128xf32>
    %20 = vector.shape_cast %19 : vector<1x2x128xf32> to vector<2x128xf32>
    %cst_11 = arith.constant dense<0.000000e+00> : vector<2x128xf32>
    %21 = tpu.matmul %17, %1, %cst_11 {dimension_numbers = #tpu.dot_dimension_numbers<[1], [0], [0], [1], [0, 0, 1, 1], [], []>} : vector<2x32xf32>, vector<32x128xf32>, vector<2x128xf32> -> vector<2x128xf32>
    %22 = arith.addf %20, %21 : vector<2x128xf32>
    %23 = vector.extract_strided_slice %22 {offsets = [0, 0], sizes = [2, 32], strides = [1, 1]} : vector<2x128xf32> to vector<2x32xf32>
    %24 = arith.negf %23 : vector<2x32xf32>
    %25 = math.exp %24 : vector<2x32xf32>
    %cst_12 = arith.constant 1.000000e+00 : f32
    %26 = vector.broadcast %cst_12 : f32 to vector<2x32xf32>
    %27 = arith.addf %26, %25 : vector<2x32xf32>
    %28 = arith.divf %26, %27 : vector<2x32xf32>
    %29 = vector.extract_strided_slice %22 {offsets = [0, 32], sizes = [2, 32], strides = [1, 1]} : vector<2x128xf32> to vector<2x32xf32>
    %30 = arith.negf %29 : vector<2x32xf32>
    %31 = math.exp %30 : vector<2x32xf32>
    %cst_13 = arith.constant 1.000000e+00 : f32
    %32 = vector.broadcast %cst_13 : f32 to vector<2x32xf32>
    %33 = arith.addf %32, %31 : vector<2x32xf32>
    %34 = arith.divf %32, %33 : vector<2x32xf32>
    %35 = vector.extract_strided_slice %22 {offsets = [0, 64], sizes = [2, 32], strides = [1, 1]} : vector<2x128xf32> to vector<2x32xf32>
    %36 = math.tanh %35 : vector<2x32xf32>
    %37 = vector.extract_strided_slice %22 {offsets = [0, 96], sizes = [2, 32], strides = [1, 1]} : vector<2x128xf32> to vector<2x32xf32>
    %38 = arith.negf %37 : vector<2x32xf32>
    %39 = math.exp %38 : vector<2x32xf32>
    %cst_14 = arith.constant 1.000000e+00 : f32
    %40 = vector.broadcast %cst_14 : f32 to vector<2x32xf32>
    %41 = arith.addf %40, %39 : vector<2x32xf32>
    %42 = arith.divf %40, %41 : vector<2x32xf32>
    %43 = arith.mulf %34, %18 : vector<2x32xf32>
    %44 = arith.mulf %28, %36 : vector<2x32xf32>
    %45 = arith.addf %43, %44 : vector<2x32xf32>
    %46 = math.tanh %45 : vector<2x32xf32>
    %47 = arith.mulf %42, %46 : vector<2x32xf32>
    %48 = vector.extract_strided_slice %16 {offsets = [1, 0, 0], sizes = [1, 2, 128], strides = [1, 1, 1]} : vector<8x2x128xf32> to vector<1x2x128xf32>
    %49 = vector.shape_cast %48 : vector<1x2x128xf32> to vector<2x128xf32>
    %cst_15 = arith.constant dense<0.000000e+00> : vector<2x128xf32>
    %50 = tpu.matmul %47, %1, %cst_15 {dimension_numbers = #tpu.dot_dimension_numbers<[1], [0], [0], [1], [0, 0, 1, 1], [], []>} : vector<2x32xf32>, vector<32x128xf32>, vector<2x128xf32> -> vector<2x128xf32>
    %51 = arith.addf %49, %50 : vector<2x128xf32>
    %52 = vector.extract_strided_slice %51 {offsets = [0, 0], sizes = [2, 32], strides = [1, 1]} : vector<2x128xf32> to vector<2x32xf32>
    %53 = arith.negf %52 : vector<2x32xf32>
    %54 = math.exp %53 : vector<2x32xf32>
    %cst_16 = arith.constant 1.000000e+00 : f32
    %55 = vector.broadcast %cst_16 : f32 to vector<2x32xf32>
    %56 = arith.addf %55, %54 : vector<2x32xf32>
    %57 = arith.divf %55, %56 : vector<2x32xf32>
    %58 = vector.extract_strided_slice %51 {offsets = [0, 32], sizes = [2, 32], strides = [1, 1]} : vector<2x128xf32> to vector<2x32xf32>
    %59 = arith.negf %58 : vector<2x32xf32>
    %60 = math.exp %59 : vector<2x32xf32>
    %cst_17 = arith.constant 1.000000e+00 : f32
    %61 = vector.broadcast %cst_17 : f32 to vector<2x32xf32>
    %62 = arith.addf %61, %60 : vector<2x32xf32>
    %63 = arith.divf %61, %62 : vector<2x32xf32>
    %64 = vector.extract_strided_slice %51 {offsets = [0, 64], sizes = [2, 32], strides = [1, 1]} : vector<2x128xf32> to vector<2x32xf32>
    %65 = math.tanh %64 : vector<2x32xf32>
    %66 = vector.extract_strided_slice %51 {offsets = [0, 96], sizes = [2, 32], strides = [1, 1]} : vector<2x128xf32> to vector<2x32xf32>
    %67 = arith.negf %66 : vector<2x32xf32>
    %68 = math.exp %67 : vector<2x32xf32>
    %cst_18 = arith.constant 1.000000e+00 : f32
    %69 = vector.broadcast %cst_18 : f32 to vector<2x32xf32>
    %70 = arith.addf %69, %68 : vector<2x32xf32>
    %71 = arith.divf %69, %70 : vector<2x32xf32>
    %72 = arith.mulf %63, %45 : vector<2x32xf32>
    %73 = arith.mulf %57, %65 : vector<2x32xf32>
    %74 = arith.addf %72, %73 : vector<2x32xf32>
    %75 = math.tanh %74 : vector<2x32xf32>
    %76 = arith.mulf %71, %75 : vector<2x32xf32>
    %77 = vector.extract_strided_slice %16 {offsets = [2, 0, 0], sizes = [1, 2, 128], strides = [1, 1, 1]} : vector<8x2x128xf32> to vector<1x2x128xf32>
    %78 = vector.shape_cast %77 : vector<1x2x128xf32> to vector<2x128xf32>
    %cst_19 = arith.constant dense<0.000000e+00> : vector<2x128xf32>
    %79 = tpu.matmul %76, %1, %cst_19 {dimension_numbers = #tpu.dot_dimension_numbers<[1], [0], [0], [1], [0, 0, 1, 1], [], []>} : vector<2x32xf32>, vector<32x128xf32>, vector<2x128xf32> -> vector<2x128xf32>
    %80 = arith.addf %78, %79 : vector<2x128xf32>
    %81 = vector.extract_strided_slice %80 {offsets = [0, 0], sizes = [2, 32], strides = [1, 1]} : vector<2x128xf32> to vector<2x32xf32>
    %82 = arith.negf %81 : vector<2x32xf32>
    %83 = math.exp %82 : vector<2x32xf32>
    %cst_20 = arith.constant 1.000000e+00 : f32
    %84 = vector.broadcast %cst_20 : f32 to vector<2x32xf32>
    %85 = arith.addf %84, %83 : vector<2x32xf32>
    %86 = arith.divf %84, %85 : vector<2x32xf32>
    %87 = vector.extract_strided_slice %80 {offsets = [0, 32], sizes = [2, 32], strides = [1, 1]} : vector<2x128xf32> to vector<2x32xf32>
    %88 = arith.negf %87 : vector<2x32xf32>
    %89 = math.exp %88 : vector<2x32xf32>
    %cst_21 = arith.constant 1.000000e+00 : f32
    %90 = vector.broadcast %cst_21 : f32 to vector<2x32xf32>
    %91 = arith.addf %90, %89 : vector<2x32xf32>
    %92 = arith.divf %90, %91 : vector<2x32xf32>
    %93 = vector.extract_strided_slice %80 {offsets = [0, 64], sizes = [2, 32], strides = [1, 1]} : vector<2x128xf32> to vector<2x32xf32>
    %94 = math.tanh %93 : vector<2x32xf32>
    %95 = vector.extract_strided_slice %80 {offsets = [0, 96], sizes = [2, 32], strides = [1, 1]} : vector<2x128xf32> to vector<2x32xf32>
    %96 = arith.negf %95 : vector<2x32xf32>
    %97 = math.exp %96 : vector<2x32xf32>
    %cst_22 = arith.constant 1.000000e+00 : f32
    %98 = vector.broadcast %cst_22 : f32 to vector<2x32xf32>
    %99 = arith.addf %98, %97 : vector<2x32xf32>
    %100 = arith.divf %98, %99 : vector<2x32xf32>
    %101 = arith.mulf %92, %74 : vector<2x32xf32>
    %102 = arith.mulf %86, %94 : vector<2x32xf32>
    %103 = arith.addf %101, %102 : vector<2x32xf32>
    %104 = math.tanh %103 : vector<2x32xf32>
    %105 = arith.mulf %100, %104 : vector<2x32xf32>
    %106 = vector.extract_strided_slice %16 {offsets = [3, 0, 0], sizes = [1, 2, 128], strides = [1, 1, 1]} : vector<8x2x128xf32> to vector<1x2x128xf32>
    %107 = vector.shape_cast %106 : vector<1x2x128xf32> to vector<2x128xf32>
    %cst_23 = arith.constant dense<0.000000e+00> : vector<2x128xf32>
    %108 = tpu.matmul %105, %1, %cst_23 {dimension_numbers = #tpu.dot_dimension_numbers<[1], [0], [0], [1], [0, 0, 1, 1], [], []>} : vector<2x32xf32>, vector<32x128xf32>, vector<2x128xf32> -> vector<2x128xf32>
    %109 = arith.addf %107, %108 : vector<2x128xf32>
    %110 = vector.extract_strided_slice %109 {offsets = [0, 0], sizes = [2, 32], strides = [1, 1]} : vector<2x128xf32> to vector<2x32xf32>
    %111 = arith.negf %110 : vector<2x32xf32>
    %112 = math.exp %111 : vector<2x32xf32>
    %cst_24 = arith.constant 1.000000e+00 : f32
    %113 = vector.broadcast %cst_24 : f32 to vector<2x32xf32>
    %114 = arith.addf %113, %112 : vector<2x32xf32>
    %115 = arith.divf %113, %114 : vector<2x32xf32>
    %116 = vector.extract_strided_slice %109 {offsets = [0, 32], sizes = [2, 32], strides = [1, 1]} : vector<2x128xf32> to vector<2x32xf32>
    %117 = arith.negf %116 : vector<2x32xf32>
    %118 = math.exp %117 : vector<2x32xf32>
    %cst_25 = arith.constant 1.000000e+00 : f32
    %119 = vector.broadcast %cst_25 : f32 to vector<2x32xf32>
    %120 = arith.addf %119, %118 : vector<2x32xf32>
    %121 = arith.divf %119, %120 : vector<2x32xf32>
    %122 = vector.extract_strided_slice %109 {offsets = [0, 64], sizes = [2, 32], strides = [1, 1]} : vector<2x128xf32> to vector<2x32xf32>
    %123 = math.tanh %122 : vector<2x32xf32>
    %124 = vector.extract_strided_slice %109 {offsets = [0, 96], sizes = [2, 32], strides = [1, 1]} : vector<2x128xf32> to vector<2x32xf32>
    %125 = arith.negf %124 : vector<2x32xf32>
    %126 = math.exp %125 : vector<2x32xf32>
    %cst_26 = arith.constant 1.000000e+00 : f32
    %127 = vector.broadcast %cst_26 : f32 to vector<2x32xf32>
    %128 = arith.addf %127, %126 : vector<2x32xf32>
    %129 = arith.divf %127, %128 : vector<2x32xf32>
    %130 = arith.mulf %121, %103 : vector<2x32xf32>
    %131 = arith.mulf %115, %123 : vector<2x32xf32>
    %132 = arith.addf %130, %131 : vector<2x32xf32>
    %133 = math.tanh %132 : vector<2x32xf32>
    %134 = arith.mulf %129, %133 : vector<2x32xf32>
    %135 = vector.extract_strided_slice %16 {offsets = [4, 0, 0], sizes = [1, 2, 128], strides = [1, 1, 1]} : vector<8x2x128xf32> to vector<1x2x128xf32>
    %136 = vector.shape_cast %135 : vector<1x2x128xf32> to vector<2x128xf32>
    %cst_27 = arith.constant dense<0.000000e+00> : vector<2x128xf32>
    %137 = tpu.matmul %134, %1, %cst_27 {dimension_numbers = #tpu.dot_dimension_numbers<[1], [0], [0], [1], [0, 0, 1, 1], [], []>} : vector<2x32xf32>, vector<32x128xf32>, vector<2x128xf32> -> vector<2x128xf32>
    %138 = arith.addf %136, %137 : vector<2x128xf32>
    %139 = vector.extract_strided_slice %138 {offsets = [0, 0], sizes = [2, 32], strides = [1, 1]} : vector<2x128xf32> to vector<2x32xf32>
    %140 = arith.negf %139 : vector<2x32xf32>
    %141 = math.exp %140 : vector<2x32xf32>
    %cst_28 = arith.constant 1.000000e+00 : f32
    %142 = vector.broadcast %cst_28 : f32 to vector<2x32xf32>
    %143 = arith.addf %142, %141 : vector<2x32xf32>
    %144 = arith.divf %142, %143 : vector<2x32xf32>
    %145 = vector.extract_strided_slice %138 {offsets = [0, 32], sizes = [2, 32], strides = [1, 1]} : vector<2x128xf32> to vector<2x32xf32>
    %146 = arith.negf %145 : vector<2x32xf32>
    %147 = math.exp %146 : vector<2x32xf32>
    %cst_29 = arith.constant 1.000000e+00 : f32
    %148 = vector.broadcast %cst_29 : f32 to vector<2x32xf32>
    %149 = arith.addf %148, %147 : vector<2x32xf32>
    %150 = arith.divf %148, %149 : vector<2x32xf32>
    %151 = vector.extract_strided_slice %138 {offsets = [0, 64], sizes = [2, 32], strides = [1, 1]} : vector<2x128xf32> to vector<2x32xf32>
    %152 = math.tanh %151 : vector<2x32xf32>
    %153 = vector.extract_strided_slice %138 {offsets = [0, 96], sizes = [2, 32], strides = [1, 1]} : vector<2x128xf32> to vector<2x32xf32>
    %154 = arith.negf %153 : vector<2x32xf32>
    %155 = math.exp %154 : vector<2x32xf32>
    %cst_30 = arith.constant 1.000000e+00 : f32
    %156 = vector.broadcast %cst_30 : f32 to vector<2x32xf32>
    %157 = arith.addf %156, %155 : vector<2x32xf32>
    %158 = arith.divf %156, %157 : vector<2x32xf32>
    %159 = arith.mulf %150, %132 : vector<2x32xf32>
    %160 = arith.mulf %144, %152 : vector<2x32xf32>
    %161 = arith.addf %159, %160 : vector<2x32xf32>
    %162 = math.tanh %161 : vector<2x32xf32>
    %163 = arith.mulf %158, %162 : vector<2x32xf32>
    %164 = vector.extract_strided_slice %16 {offsets = [5, 0, 0], sizes = [1, 2, 128], strides = [1, 1, 1]} : vector<8x2x128xf32> to vector<1x2x128xf32>
    %165 = vector.shape_cast %164 : vector<1x2x128xf32> to vector<2x128xf32>
    %cst_31 = arith.constant dense<0.000000e+00> : vector<2x128xf32>
    %166 = tpu.matmul %163, %1, %cst_31 {dimension_numbers = #tpu.dot_dimension_numbers<[1], [0], [0], [1], [0, 0, 1, 1], [], []>} : vector<2x32xf32>, vector<32x128xf32>, vector<2x128xf32> -> vector<2x128xf32>
    %167 = arith.addf %165, %166 : vector<2x128xf32>
    %168 = vector.extract_strided_slice %167 {offsets = [0, 0], sizes = [2, 32], strides = [1, 1]} : vector<2x128xf32> to vector<2x32xf32>
    %169 = arith.negf %168 : vector<2x32xf32>
    %170 = math.exp %169 : vector<2x32xf32>
    %cst_32 = arith.constant 1.000000e+00 : f32
    %171 = vector.broadcast %cst_32 : f32 to vector<2x32xf32>
    %172 = arith.addf %171, %170 : vector<2x32xf32>
    %173 = arith.divf %171, %172 : vector<2x32xf32>
    %174 = vector.extract_strided_slice %167 {offsets = [0, 32], sizes = [2, 32], strides = [1, 1]} : vector<2x128xf32> to vector<2x32xf32>
    %175 = arith.negf %174 : vector<2x32xf32>
    %176 = math.exp %175 : vector<2x32xf32>
    %cst_33 = arith.constant 1.000000e+00 : f32
    %177 = vector.broadcast %cst_33 : f32 to vector<2x32xf32>
    %178 = arith.addf %177, %176 : vector<2x32xf32>
    %179 = arith.divf %177, %178 : vector<2x32xf32>
    %180 = vector.extract_strided_slice %167 {offsets = [0, 64], sizes = [2, 32], strides = [1, 1]} : vector<2x128xf32> to vector<2x32xf32>
    %181 = math.tanh %180 : vector<2x32xf32>
    %182 = vector.extract_strided_slice %167 {offsets = [0, 96], sizes = [2, 32], strides = [1, 1]} : vector<2x128xf32> to vector<2x32xf32>
    %183 = arith.negf %182 : vector<2x32xf32>
    %184 = math.exp %183 : vector<2x32xf32>
    %cst_34 = arith.constant 1.000000e+00 : f32
    %185 = vector.broadcast %cst_34 : f32 to vector<2x32xf32>
    %186 = arith.addf %185, %184 : vector<2x32xf32>
    %187 = arith.divf %185, %186 : vector<2x32xf32>
    %188 = arith.mulf %179, %161 : vector<2x32xf32>
    %189 = arith.mulf %173, %181 : vector<2x32xf32>
    %190 = arith.addf %188, %189 : vector<2x32xf32>
    %191 = math.tanh %190 : vector<2x32xf32>
    %192 = arith.mulf %187, %191 : vector<2x32xf32>
    %193 = vector.extract_strided_slice %16 {offsets = [6, 0, 0], sizes = [1, 2, 128], strides = [1, 1, 1]} : vector<8x2x128xf32> to vector<1x2x128xf32>
    %194 = vector.shape_cast %193 : vector<1x2x128xf32> to vector<2x128xf32>
    %cst_35 = arith.constant dense<0.000000e+00> : vector<2x128xf32>
    %195 = tpu.matmul %192, %1, %cst_35 {dimension_numbers = #tpu.dot_dimension_numbers<[1], [0], [0], [1], [0, 0, 1, 1], [], []>} : vector<2x32xf32>, vector<32x128xf32>, vector<2x128xf32> -> vector<2x128xf32>
    %196 = arith.addf %194, %195 : vector<2x128xf32>
    %197 = vector.extract_strided_slice %196 {offsets = [0, 0], sizes = [2, 32], strides = [1, 1]} : vector<2x128xf32> to vector<2x32xf32>
    %198 = arith.negf %197 : vector<2x32xf32>
    %199 = math.exp %198 : vector<2x32xf32>
    %cst_36 = arith.constant 1.000000e+00 : f32
    %200 = vector.broadcast %cst_36 : f32 to vector<2x32xf32>
    %201 = arith.addf %200, %199 : vector<2x32xf32>
    %202 = arith.divf %200, %201 : vector<2x32xf32>
    %203 = vector.extract_strided_slice %196 {offsets = [0, 32], sizes = [2, 32], strides = [1, 1]} : vector<2x128xf32> to vector<2x32xf32>
    %204 = arith.negf %203 : vector<2x32xf32>
    %205 = math.exp %204 : vector<2x32xf32>
    %cst_37 = arith.constant 1.000000e+00 : f32
    %206 = vector.broadcast %cst_37 : f32 to vector<2x32xf32>
    %207 = arith.addf %206, %205 : vector<2x32xf32>
    %208 = arith.divf %206, %207 : vector<2x32xf32>
    %209 = vector.extract_strided_slice %196 {offsets = [0, 64], sizes = [2, 32], strides = [1, 1]} : vector<2x128xf32> to vector<2x32xf32>
    %210 = math.tanh %209 : vector<2x32xf32>
    %211 = vector.extract_strided_slice %196 {offsets = [0, 96], sizes = [2, 32], strides = [1, 1]} : vector<2x128xf32> to vector<2x32xf32>
    %212 = arith.negf %211 : vector<2x32xf32>
    %213 = math.exp %212 : vector<2x32xf32>
    %cst_38 = arith.constant 1.000000e+00 : f32
    %214 = vector.broadcast %cst_38 : f32 to vector<2x32xf32>
    %215 = arith.addf %214, %213 : vector<2x32xf32>
    %216 = arith.divf %214, %215 : vector<2x32xf32>
    %217 = arith.mulf %208, %190 : vector<2x32xf32>
    %218 = arith.mulf %202, %210 : vector<2x32xf32>
    %219 = arith.addf %217, %218 : vector<2x32xf32>
    %220 = math.tanh %219 : vector<2x32xf32>
    %221 = arith.mulf %216, %220 : vector<2x32xf32>
    %222 = vector.extract_strided_slice %16 {offsets = [7, 0, 0], sizes = [1, 2, 128], strides = [1, 1, 1]} : vector<8x2x128xf32> to vector<1x2x128xf32>
    %223 = vector.shape_cast %222 : vector<1x2x128xf32> to vector<2x128xf32>
    %cst_39 = arith.constant dense<0.000000e+00> : vector<2x128xf32>
    %224 = tpu.matmul %221, %1, %cst_39 {dimension_numbers = #tpu.dot_dimension_numbers<[1], [0], [0], [1], [0, 0, 1, 1], [], []>} : vector<2x32xf32>, vector<32x128xf32>, vector<2x128xf32> -> vector<2x128xf32>
    %225 = arith.addf %223, %224 : vector<2x128xf32>
    %226 = vector.extract_strided_slice %225 {offsets = [0, 0], sizes = [2, 32], strides = [1, 1]} : vector<2x128xf32> to vector<2x32xf32>
    %227 = arith.negf %226 : vector<2x32xf32>
    %228 = math.exp %227 : vector<2x32xf32>
    %cst_40 = arith.constant 1.000000e+00 : f32
    %229 = vector.broadcast %cst_40 : f32 to vector<2x32xf32>
    %230 = arith.addf %229, %228 : vector<2x32xf32>
    %231 = arith.divf %229, %230 : vector<2x32xf32>
    %232 = vector.extract_strided_slice %225 {offsets = [0, 32], sizes = [2, 32], strides = [1, 1]} : vector<2x128xf32> to vector<2x32xf32>
    %233 = arith.negf %232 : vector<2x32xf32>
    %234 = math.exp %233 : vector<2x32xf32>
    %cst_41 = arith.constant 1.000000e+00 : f32
    %235 = vector.broadcast %cst_41 : f32 to vector<2x32xf32>
    %236 = arith.addf %235, %234 : vector<2x32xf32>
    %237 = arith.divf %235, %236 : vector<2x32xf32>
    %238 = vector.extract_strided_slice %225 {offsets = [0, 64], sizes = [2, 32], strides = [1, 1]} : vector<2x128xf32> to vector<2x32xf32>
    %239 = math.tanh %238 : vector<2x32xf32>
    %240 = vector.extract_strided_slice %225 {offsets = [0, 96], sizes = [2, 32], strides = [1, 1]} : vector<2x128xf32> to vector<2x32xf32>
    %241 = arith.negf %240 : vector<2x32xf32>
    %242 = math.exp %241 : vector<2x32xf32>
    %cst_42 = arith.constant 1.000000e+00 : f32
    %243 = vector.broadcast %cst_42 : f32 to vector<2x32xf32>
    %244 = arith.addf %243, %242 : vector<2x32xf32>
    %245 = arith.divf %243, %244 : vector<2x32xf32>
    %246 = arith.mulf %237, %219 : vector<2x32xf32>
    %247 = arith.mulf %231, %239 : vector<2x32xf32>
    %248 = arith.addf %246, %247 : vector<2x32xf32>
    %249 = math.tanh %248 : vector<2x32xf32>
    %250 = arith.mulf %245, %249 : vector<2x32xf32>
    %251 = vector.shape_cast %47 : vector<2x32xf32> to vector<2x1x32xf32>
    %252 = vector.shape_cast %76 : vector<2x32xf32> to vector<2x1x32xf32>
    %253 = vector.shape_cast %105 : vector<2x32xf32> to vector<2x1x32xf32>
    %254 = vector.shape_cast %134 : vector<2x32xf32> to vector<2x1x32xf32>
    %255 = vector.shape_cast %163 : vector<2x32xf32> to vector<2x1x32xf32>
    %256 = vector.shape_cast %192 : vector<2x32xf32> to vector<2x1x32xf32>
    %257 = vector.shape_cast %221 : vector<2x32xf32> to vector<2x1x32xf32>
    %258 = vector.shape_cast %250 : vector<2x32xf32> to vector<2x1x32xf32>
    %259 = tpu.concatenate %251, %252, %253, %254, %255, %256, %257, %258 in 1 : vector<2x1x32xf32>, vector<2x1x32xf32>, vector<2x1x32xf32>, vector<2x1x32xf32>, vector<2x1x32xf32>, vector<2x1x32xf32>, vector<2x1x32xf32>, vector<2x1x32xf32> -> vector<2x8x32xf32>
    %c0_43 = arith.constant 0 : index
    %c0_44 = arith.constant 0 : index
    %c0_45 = arith.constant 0 : index
    %260 = vector.load %arg2[%c0_43, %c0_44, %c0_45] : memref<2x8x1xf32, #tpu.memory_space<vmem>>, vector<2x8x1xf32>
    %c0_46 = arith.constant 0 : index
    %c0_47 = arith.constant 0 : index
    %261 = vector.load %arg6[%c0_46, %c0_47] : memref<32x8xf32, #tpu.memory_space<vmem>>, vector<32x8xf32>
    %c0_48 = arith.constant 0 : index
    %c0_49 = arith.constant 0 : index
    %262 = vector.load %arg7[%c0_48, %c0_49] : memref<1x8xf32, #tpu.memory_space<vmem>>, vector<1x8xf32>
    %263 = vector.extract_strided_slice %260 {offsets = [0, 0, 0], sizes = [1, 8, 1], strides = [1, 1, 1]} : vector<2x8x1xf32> to vector<1x8x1xf32>
    %264 = vector.shape_cast %263 : vector<1x8x1xf32> to vector<8x1xf32>
    %cst_50 = arith.constant 5.000000e-01 : f32
    %265 = vector.broadcast %cst_50 : f32 to vector<8x1xf32>
    %266 = arith.cmpf ogt, %264, %265 : vector<8x1xf32>
    %267 = vector.extract_strided_slice %259 {offsets = [0, 0, 0], sizes = [1, 8, 32], strides = [1, 1, 1]} : vector<2x8x32xf32> to vector<1x8x32xf32>
    %268 = vector.shape_cast %267 : vector<1x8x32xf32> to vector<8x32xf32>
    %cst_51 = arith.constant -9.99999984E+17 : f32
    %269 = vector.shape_cast %266 : vector<8x1xi1> to vector<8x1xi1>
    %270 = vector.broadcast %269 : vector<8x1xi1> to vector<8x32xi1>
    %271 = vector.broadcast %cst_51 : f32 to vector<8x32xf32>
    %272 = arith.select %270, %268, %271 : vector<8x32xi1>, vector<8x32xf32>
    %cst_52 = arith.constant dense<0.000000e+00> : vector<8x8xf32>
    %273 = tpu.matmul %272, %261, %cst_52 {dimension_numbers = #tpu.dot_dimension_numbers<[1], [0], [0], [1], [0, 0, 1, 1], [], []>} : vector<8x32xf32>, vector<32x8xf32>, vector<8x8xf32> -> vector<8x8xf32>
    %274 = vector.broadcast %262 : vector<1x8xf32> to vector<8x8xf32>
    %275 = arith.addf %273, %274 : vector<8x8xf32>
    %cst_53 = arith.constant dense<0xFF800000> : vector<8xf32>
    %276 = vector.multi_reduction <maximumf>, %275, %cst_53 [1] : vector<8x8xf32> to vector<8xf32>
    %277 = vector.shape_cast %276 : vector<8xf32> to vector<8x1xf32>
    %278 = vector.broadcast %277 : vector<8x1xf32> to vector<8x8xf32>
    %279 = arith.subf %275, %278 : vector<8x8xf32>
    %280 = math.exp %279 : vector<8x8xf32>
    %cst_54 = arith.constant dense<0.000000e+00> : vector<8xf32>
    %281 = vector.multi_reduction <add>, %280, %cst_54 [1] : vector<8x8xf32> to vector<8xf32>
    %282 = vector.shape_cast %281 : vector<8xf32> to vector<8x1xf32>
    %283 = math.log %282 : vector<8x1xf32>
    %284 = vector.broadcast %283 : vector<8x1xf32> to vector<8x8xf32>
    %285 = arith.subf %279, %284 : vector<8x8xf32>
    %c0_55 = arith.constant 0 : index
    %c0_56 = arith.constant 0 : index
    %c0_57 = arith.constant 0 : index
    %286 = vector.load %arg8[%c0_55, %c0_56, %c0_57] : memref<2x8x8xf32, #tpu.memory_space<vmem>>, vector<1x8x8xf32>
    %287 = vector.shape_cast %286 : vector<1x8x8xf32> to vector<8x8xf32>
    %288 = vector.shape_cast %285 : vector<8x8xf32> to vector<1x8x8xf32>
    tpu.vector_store %arg8[%c0_55, %c0_56, %c0_57], %288 {strides = array<i32>} : memref<2x8x8xf32, #tpu.memory_space<vmem>>, vector<1x8x8xf32>,
    %289 = vector.extract_strided_slice %260 {offsets = [1, 0, 0], sizes = [1, 8, 1], strides = [1, 1, 1]} : vector<2x8x1xf32> to vector<1x8x1xf32>
    %290 = vector.shape_cast %289 : vector<1x8x1xf32> to vector<8x1xf32>
    %cst_58 = arith.constant 5.000000e-01 : f32
    %291 = vector.broadcast %cst_58 : f32 to vector<8x1xf32>
    %292 = arith.cmpf ogt, %290, %291 : vector<8x1xf32>
    %293 = vector.extract_strided_slice %259 {offsets = [1, 0, 0], sizes = [1, 8, 32], strides = [1, 1, 1]} : vector<2x8x32xf32> to vector<1x8x32xf32>
    %294 = vector.shape_cast %293 : vector<1x8x32xf32> to vector<8x32xf32>
    %cst_59 = arith.constant -9.99999984E+17 : f32
    %295 = vector.shape_cast %292 : vector<8x1xi1> to vector<8x1xi1>
    %296 = vector.broadcast %295 : vector<8x1xi1> to vector<8x32xi1>
    %297 = vector.broadcast %cst_59 : f32 to vector<8x32xf32>
    %298 = arith.select %296, %294, %297 : vector<8x32xi1>, vector<8x32xf32>
    %cst_60 = arith.constant dense<0.000000e+00> : vector<8x8xf32>
    %299 = tpu.matmul %298, %261, %cst_60 {dimension_numbers = #tpu.dot_dimension_numbers<[1], [0], [0], [1], [0, 0, 1, 1], [], []>} : vector<8x32xf32>, vector<32x8xf32>, vector<8x8xf32> -> vector<8x8xf32>
    %300 = vector.broadcast %262 : vector<1x8xf32> to vector<8x8xf32>
    %301 = arith.addf %299, %300 : vector<8x8xf32>
    %cst_61 = arith.constant dense<0xFF800000> : vector<8xf32>
    %302 = vector.multi_reduction <maximumf>, %301, %cst_61 [1] : vector<8x8xf32> to vector<8xf32>
    %303 = vector.shape_cast %302 : vector<8xf32> to vector<8x1xf32>
    %304 = vector.broadcast %303 : vector<8x1xf32> to vector<8x8xf32>
    %305 = arith.subf %301, %304 : vector<8x8xf32>
    %306 = math.exp %305 : vector<8x8xf32>
    %cst_62 = arith.constant dense<0.000000e+00> : vector<8xf32>
    %307 = vector.multi_reduction <add>, %306, %cst_62 [1] : vector<8x8xf32> to vector<8xf32>
    %308 = vector.shape_cast %307 : vector<8xf32> to vector<8x1xf32>
    %309 = math.log %308 : vector<8x1xf32>
    %310 = vector.broadcast %309 : vector<8x1xf32> to vector<8x8xf32>
    %311 = arith.subf %305, %310 : vector<8x8xf32>
    %c1 = arith.constant 1 : index
    %c0_63 = arith.constant 0 : index
    %c0_64 = arith.constant 0 : index
    %312 = vector.load %arg8[%c1, %c0_63, %c0_64] : memref<2x8x8xf32, #tpu.memory_space<vmem>>, vector<1x8x8xf32>
    %313 = vector.shape_cast %312 : vector<1x8x8xf32> to vector<8x8xf32>
    %314 = vector.shape_cast %311 : vector<8x8xf32> to vector<1x8x8xf32>
    tpu.vector_store %arg8[%c1, %c0_63, %c0_64], %314 {strides = array<i32>} : memref<2x8x8xf32, #tpu.memory_space<vmem>>, vector<1x8x8xf32>,
    return
  }
  func.func @transform_0(%arg0: i32) -> (i32, i32, i32) {
    %c0_i32 = arith.constant 0 : i32
    %c0_i32_0 = arith.constant 0 : i32
    %c0_i32_1 = arith.constant 0 : i32
    %c0_i32_2 = arith.constant 0 : i32
    return %c0_i32, %c0_i32_0, %c0_i32_1 : i32, i32, i32
  }
  func.func @transform_1(%arg0: i32) -> (i32, i32, i32) {
    %c0_i32 = arith.constant 0 : i32
    %c0_i32_0 = arith.constant 0 : i32
    %c0_i32_1 = arith.constant 0 : i32
    %c0_i32_2 = arith.constant 0 : i32
    return %c0_i32, %c0_i32_0, %c0_i32_1 : i32, i32, i32
  }
  func.func @transform_2(%arg0: i32) -> (i32, i32) {
    %c0_i32 = arith.constant 0 : i32
    %c0_i32_0 = arith.constant 0 : i32
    %c0_i32_1 = arith.constant 0 : i32
    return %c0_i32, %c0_i32_0 : i32, i32
  }
  func.func @transform_3(%arg0: i32) -> (i32, i32) {
    %c0_i32 = arith.constant 0 : i32
    %c0_i32_0 = arith.constant 0 : i32
    %c0_i32_1 = arith.constant 0 : i32
    return %c0_i32, %c0_i32_0 : i32, i32
  }
  func.func @transform_4(%arg0: i32) -> (i32, i32) {
    %c0_i32 = arith.constant 0 : i32
    %c0_i32_0 = arith.constant 0 : i32
    %c0_i32_1 = arith.constant 0 : i32
    return %c0_i32, %c0_i32_0 : i32, i32
  }
  func.func @transform_5(%arg0: i32) -> (i32, i32) {
    %c0_i32 = arith.constant 0 : i32
    %c0_i32_0 = arith.constant 0 : i32
    %c0_i32_1 = arith.constant 0 : i32
    return %c0_i32, %c0_i32_0 : i32, i32
  }
  func.func @transform_6(%arg0: i32) -> (i32, i32) {
    %c0_i32 = arith.constant 0 : i32
    %c0_i32_0 = arith.constant 0 : i32
    %c0_i32_1 = arith.constant 0 : i32
    return %c0_i32, %c0_i32_0 : i32, i32
  }
  func.func @transform_7(%arg0: i32) -> (i32, i32, i32) {
    %c0_i32 = arith.constant 0 : i32
    %c0_i32_0 = arith.constant 0 : i32
    %c0_i32_1 = arith.constant 0 : i32
    %c0_i32_2 = arith.constant 0 : i32
    return %c0_i32, %c0_i32_0, %c0_i32_1 : i32, i32, i32
  }
}

</mosaic_0001>

<bundles_post_ra>
// kernel: lstm_tagger_forward.1
= control target key start
LH: loop header
LB: loop body
LE: loop exit
PB: predicated region body
PF: predicated region fallthrough
CT: control target
= control target key end

     0   :  { %v1954_v1 = vmov 0.0   ;;  %s2319_s0 = inlined_call_operand.vmem [shape: f32[2,8,32], index: 0, kind: input, shape index: {}]   ;;  %s2320_s1 = inlined_call_operand.vmem [shape: f32[2,8,1], index: 1, kind: input, shape index: {}]   ;;  %s2321_s2 = inlined_call_operand.vmem [shape: f32[32,128], index: 2, kind: input, shape index: {}]   ;;  %s2322_s3 = inlined_call_operand.vmem [shape: f32[32,128], index: 3, kind: input, shape index: {}]   ;;  %s2323_s4 = inlined_call_operand.vmem [shape: f32[1,128], index: 4, kind: input, shape index: {}]   ;;  %s2324_s5 = inlined_call_operand.vmem [shape: f32[32,8], index: 5, kind: input, shape index: {}]   ;;  %s2325_s6 = inlined_call_operand.vmem [shape: f32[1,8], index: 6, kind: input, shape index: {}]   ;;  %s2326_s7 = inlined_call_operand.hbm [shape: f32[2,8,8], index: 7, kind: output, shape index: {}]  }
   0x1   :  { %v30_v0 = vld [vmem:[%s2321_s2 + $0x18] sm:$0xff]  ;;  %1717 = vmatprep.subr.mxu0 %v1954_v1  ;;  %1728 = vmatprep.subr.mxu1 %v1954_v1  ;;  %v29_v2 = vld [vmem:[%s2321_s2 + $0x10] sm:$0xff]  ;;  %v28_v3 = vld [vmem:[%s2321_s2 + $0x8] sm:$0xff] }
   0x2   :  { %1718 = vmatpush3.msra.mxu0 %v30_v0  ;;  %1729 = vmatpush3.msra.mxu1 %v30_v0 }
   0x3   :  { %1719 = vmatprep.subr.mxu0 %v1954_v1  ;;  %1730 = vmatprep.subr.mxu1 %v1954_v1 }
   0x4   :  { %12 = vsyncpa [#allocation3], 0  ;;  %1720 = vmatpush3.msra.mxu0 %v29_v2  ;;  %1731 = vmatpush3.msra.mxu1 %v29_v2  ;;  %v27_v4 = vld [vmem:[%s2321_s2] sm:$0xff]  ;;  %vm44_vm0 = vcmask 261120   ;;  %v37_v6 = vld [vmem:[%s2319_s0 + $0x8] sm:$0xff]  ;;  %vm1955_vm1 = vmmov 0   ;;  %v196_v13 = vlaneseq }
   0x5   :  { %1721 = vmatprep.subr.mxu0 %v1954_v1  ;;  %1732 = vmatprep.subr.mxu1 %v1954_v1  ;;  %v36_v5 = vld [vmem:[%s2319_s0] sm:$0xff]  ;;  %v2036_v7 = vld [vmem:[%s2322_s3 + $0x18] sm:$0xff]  ;;  %v2044_v8 = vld [vmem:[%s2322_s3 + $0x10] sm:$0xff]  ;;  %v1956_v11 = vmov 1966171168   ;;  %vm339_vm2 = vcmask 1040384  }
   0x6   :  { %1722 = vmatpush3.msra.mxu0 %v28_v3  ;;  %1733 = vmatpush3.msra.mxu1 %v28_v3  ;;  %v2054_v9 = vld [vmem:[%s2322_s3 + $0x8] sm:$0xff]  ;;  %v2063_v10 = vld [vmem:[%s2322_s3] sm:$0xff]  ;;  %v194_v12 = vunpack.c.l.s4 %v1956_v11  ;;  %v197_v15 = vshrl.u32 %v196_v13, 7  ;;  %s1958_s20 = smov 32   ;;  %vm1397_vm3 = vcmask 1041408   ;;  %vm1400_vm4 = vcmask 1042432  }
   0x7   :  { %1723 = vmatprep.subr.mxu0 %v1954_v1  ;;  %1734 = vmatprep.subr.mxu1 %v1954_v1  ;;  %v1636_v16 = vld [vmem:[%s2323_s4] ss:$0 sm:$0xff]  ;;  %s1957_s4 = smov 64   ;;  %vm1403_vm5 = vcmask 1043456   ;;  %vm1406_vm6 = vcmask 1044480   ;;  %vm1409_vm7 = vcmask 1045504  }
   0x8   :  { %1724 = vmatpush3.msra.mxu0 %v27_v4  ;;  %1725 = vmatprep.mubr.msk.f32.mxu0 %vm1955_vm1, %v1954_v1  ;;  %v195_v14 = vunpack.c.0.s8 %v194_v12  ;;  %v2095_v28 = vsub.s32 0, %v197_v15  ;;  %vm1412_vm10 = vcmask 1046528   ;;  %vm1510_vm13 = vcmask 64512  }
   0x9   :  { %1735 = vmatpush3.msra.mxu1 %v27_v4  ;;  %1736 = vmatprep.mubr.msk.f32.mxu1 %vm1955_vm1, %v1954_v1 }
   0xa   :  { %1726 = vmatmul.mubr.msk.f32.vlgmr.msra.gmra.mxu0 %vm44_vm0, %v36_v5  ;;  %1737 = vmatmul.mubr.msk.f32.vlgmr.msra.gmra.mxu1 %vm44_vm0, %v37_v6  ;;  %v2091_v17 = vsub.s32 %v195_v14, %v197_v15 }
   0xb   :  { %1739 = vmatprep.subr.mxu0 %v1954_v1  ;;  %1747 = vmatprep.mubr.msk.f32.mxu0 %vm1955_vm1, %v1954_v1 }
   0xc   :  { %1740 = vmatpush3.msra.mxu0 %v2036_v7  ;;  %1750 = vmatprep.subr.mxu1 %v1954_v1 }
   0xd   :  { %1741 = vmatprep.subr.mxu0 %v1954_v1  ;;  %1751 = vmatpush3.msra.mxu1 %v2036_v7 }
   0xe   :  { %1742 = vmatpush3.msra.mxu0 %v2044_v8  ;;  %1752 = vmatprep.subr.mxu1 %v1954_v1 }
   0xf   :  { %1743 = vmatprep.subr.mxu0 %v1954_v1  ;;  %1753 = vmatpush3.msra.mxu1 %v2044_v8 }
  0x10   :  { %1744 = vmatpush3.msra.mxu0 %v2054_v9  ;;  %1754 = vmatprep.subr.mxu1 %v1954_v1 }
  0x11   :  { %1745 = vmatprep.subr.mxu0 %v1954_v1  ;;  %1755 = vmatpush3.msra.mxu1 %v2054_v9 }
  0x12   :  { %1746 = vmatpush3.msra.mxu0 %v2063_v10  ;;  %1756 = vmatprep.subr.mxu1 %v1954_v1 }
  0x13   :  { %1748 = vmatmul.mubr.f32.vlgmr.msra.gmra.mxu0 %v1954_v1  ;;  %1757 = vmatpush3.msra.mxu1 %v2063_v10 }
  0x14   :  { %1758 = vmatprep.mubr.msk.f32.mxu1 %vm1955_vm1, %v1954_v1  ;;  %1761 = vmatprep.subr.mxu0 %v1954_v1 }
  0x15   :  { %1762 = vmatpush3.msra.mxu0 %v2036_v7  ;;  %1769 = vmatprep.mubr.msk.f32.mxu0 %vm1955_vm1, %v1954_v1 }
  0x16   :  { %1763 = vmatprep.subr.mxu0 %v1954_v1  ;;  %1772 = vmatprep.subr.mxu1 %v1954_v1 }
  0x17   :  { %1764 = vmatpush3.msra.mxu0 %v2044_v8 }
  0x18   :  { %1765 = vmatprep.subr.mxu0 %v1954_v1 }
  0x19   :  { %1766 = vmatpush3.msra.mxu0 %v2054_v9 }
  0x1a   :  { %1767 = vmatprep.subr.mxu0 %v1954_v1 }
  0x1b   :  { %1768 = vmatpush3.msra.mxu0 %v2063_v10 }
  0x1c   :  { %1783 = vmatprep.subr.mxu0 %v1954_v1 }
  0xca   :  { %v114_v18 = vpop.f32.mrf.mxu0  ;;  %v187_v19 = vpop.f32.mrf.mxu1 }
  0xcb   :  { %v115_v20 = vadd.f32 %v1636_v16, %v114_v18  ;;  %v188_v21 = vadd.f32 %v1636_v16, %v187_v19 }
  0xcc   :  { %v1727_v22 = vpop.f32.mrf.mxu0  ;;  %v1738_v23 = vpop.f32.mrf.mxu1 }
  0xcd   :  { %v192_v24 = vcombine.high %v115_v20, %v115_v20  ;;  %v199_v25 = vrot.slane %v115_v20, %v2091_v17  ;;  %v250_v26 = vcombine.high %v188_v21, %v188_v21  ;;  %v257_v27 = vrot.slane %v188_v21, %v2091_v17 }
  0xcf   :  { %v206_v29 = vrot.slane %v192_v24, %v2091_v17  ;;  %v207_v30 = vcombine.high %v199_v25, %v199_v25  ;;  %v215_v31 = vrot.slane %v199_v25, %v2091_v17  ;;  %v264_v32 = vrot.slane %v250_v26, %v2091_v17 }
  0xd0   :  { %v265_v33 = vcombine.high %v257_v27, %v257_v27  ;;  %v273_v34 = vrot.slane %v257_v27, %v2091_v17 }
  0xd1   :  { %v208_v35 = vcombine.high %v206_v29, %v206_v29  ;;  %v266_v36 = vcombine.high %v264_v32, %v264_v32  ;;  %v280_v37 = vrot.slane %v264_v32, %v2091_v17  ;;  %v229_v38 = vrot.slane %v207_v30, %v2091_v17 }
  0xd2   :  { %v287_v39 = vrot.slane %v265_v33, %v2091_v17  ;;  %v295_v40 = vcombine.high %v273_v34, %v273_v34  ;;  %v302_v41 = vrot.slane %v273_v34, %v2095_v28  ;;  %v237_v42 = vcombine.high %v215_v31, %v215_v31 }
  0xd3   :  { %v417_v43 = vpop.f32.mrf.mxu0  ;;  %v239_v44 = vcombine.high %v229_v38, %v229_v38  ;;  %v222_v45 = vrot.slane %v206_v29, %v2091_v17  ;;  %v318_v46 = vrot.slane %v280_v37, %v2095_v28  ;;  %v236_v47 = vrot.slane %v208_v35, %v2091_v17 }
  0xd4   :  { %v340_v48 = vsel %vm339_vm2, %v215_v31, %v302_v41  ;;  %v306_v49 = vrot.slane %v287_v39, %v2095_v28  ;;  %v310_v50 = vrot.slane %v295_v40, %v2095_v28  ;;  %v297_v51 = vcombine.high %v287_v39, %v287_v39 }
  0xd5   :  { %v421_v52 = vadd.f32 %v417_v43, %v340_v48  ;;  %v1749_v53 = vpop.f32.mrf.mxu0  ;;  %v2112_v54 = vsel %vm339_vm2, %v222_v45, %v318_v46  ;;  %v294_v55 = vrot.slane %v266_v36, %v2091_v17  ;;  %v238_v56 = vcombine.high %v222_v45, %v222_v45 }
  0xd6   :  { %v341_v57 = vsel %vm339_vm2, %v229_v38, %v306_v49  ;;  %v2117_v58 = vsel %vm339_vm2, %v237_v42, %v310_v50  ;;  %v314_v59 = vrot.slane %v297_v51, %v2095_v28  ;;  %v296_v60 = vcombine.high %v280_v37, %v280_v37 }
  0xd7   :  { %1860 = vtanh.f32 %v421_v52  ;;  %v322_v61 = vrot.slane %v294_v55, %v2095_v28  ;;  %v240_v0 = vcombine.high %v236_v47, %v236_v47  ;;  %v298_v2 = vcombine.high %v294_v55, %v294_v55 }
  0xd8   :  { %v2122_v62 = vsel %vm339_vm2, %v239_v44, %v314_v59  ;;  %v326_v63 = vrot.slane %v296_v60, %v2095_v28  ;;  %v1639_v12 = vmul.f32 -1.442695, %v421_v52 }
  0xd9   :  { %v2126_v3 = vsel %vm339_vm2, %v236_v47, %v322_v61  ;;  %v330_v5 = vrot.slane %v298_v2, %v2095_v28 }
  0xda   :  { %v2129_v4 = vsel %vm339_vm2, %v238_v56, %v326_v63  ;;  %1862 = vpow2.f32 %v1639_v12 }
  0xdb   :  { %v2133_v6 = vsel %vm339_vm2, %v240_v0, %v330_v5 }
  0xe4   :  { %v1861_v11 = vpop.eup %1860 }
  0xe5   :  { %431 = vrot.lane.b32.xlu0 %v1861_v11, %s1957_s4 }
  0xe7   :  { %v1863_v13 = vpop.eup %1862 }
  0xe8   :  { %v425_v14 = vadd.f32 1.0, %v1863_v13 }
  0xea   :  { %1864 = vrcp.f32 %v425_v14 }
  0xf7   :  { %v1865_v15 = vpop.eup %1864 }
  0xf8   :  { %v429_v19 = vmul.f32 0.0, %v1865_v15 }
 0x157   :  { %v432_v16 = vpop.permute.xlu0 %431 }
 0x158   :  { %v434_v18 = vmul.f32 %v1865_v15, %v432_v16 }
 0x15a   :  { %436 = vrot.lane.b32.xlu0 %v434_v18, %s1958_s20 }
 0x1cc   :  { %v437_v20 = vpop.permute.xlu0 %436 }
 0x1cd   :  { %v439_v21 = vadd.f32 %v437_v20, %v429_v19 }
 0x1cf   :  { %1866 = vtanh.f32 %v439_v21 }
 0x1dc   :  { %v1867_v22 = vpop.eup %1866 }
 0x1dd   :  { %442 = vrot.lane.b32.xlu1 %v1867_v22, %s1957_s4 }
 0x24f   :  { %v443_v23 = vpop.permute.xlu1 %442 }
 0x250   :  { %v445_v24 = vmul.f32 %v1865_v15, %v443_v23 }
 0x252   :  { %447 = vrot.lane.b32.xlu1 %v445_v24, %s1958_s20  ;;  %v1152_v42 = vrot.slane %v445_v24, %v2091_v17 }
 0x254   :  { %v1153_v45 = vcombine.high %v1152_v42, %v1152_v42  ;;  %v1160_v48 = vrot.slane %v1152_v42, %v2091_v17 }
 0x256   :  { %v1167_v51 = vrot.slane %v1153_v45, %v2091_v17 }
 0x2c4   :  { %v448_v25 = vpop.permute.xlu1 %447 }
 0x2c5   :  { %1759 = vmatmul.mubr.msk.f32.vlgmr.msra.gmra.mxu1 %vm44_vm0, %v448_v25 }
 0x2c6   :  { %1773 = vmatpush3.msra.mxu1 %v2036_v7  ;;  %1780 = vmatprep.mubr.msk.f32.mxu1 %vm1955_vm1, %v1954_v1 }
 0x2c7   :  { %1774 = vmatprep.subr.mxu1 %v1954_v1 }
 0x2c8   :  { %1775 = vmatpush3.msra.mxu1 %v2044_v8 }
 0x2c9   :  { %1776 = vmatprep.subr.mxu1 %v1954_v1 }
 0x2ca   :  { %1777 = vmatpush3.msra.mxu1 %v2054_v9 }
 0x2cb   :  { %1778 = vmatprep.subr.mxu1 %v1954_v1 }
 0x2cc   :  { %1779 = vmatpush3.msra.mxu1 %v2063_v10 }
 0x2cd   :  { %1794 = vmatprep.subr.mxu1 %v1954_v1 }
 0x385   :  { %v517_v26 = vpop.f32.mrf.mxu1 }
 0x386   :  { %v521_v27 = vadd.f32 %v517_v26, %v341_v57 }
 0x387   :  { %v1760_v29 = vpop.f32.mrf.mxu1 }
 0x388   :  { %1868 = vtanh.f32 %v521_v27  ;;  %v1641_v31 = vmul.f32 -1.442695, %v521_v27 }
 0x38a   :  { %1870 = vpow2.f32 %v1641_v31 }
 0x395   :  { %v1869_v30 = vpop.eup %1868 }
 0x396   :  { %531 = vrot.lane.b32.xlu0 %v1869_v30, %s1957_s4 }
 0x397   :  { %v1871_v32 = vpop.eup %1870 }
 0x398   :  { %v525_v33 = vadd.f32 1.0, %v1871_v32 }
 0x39a   :  { %1872 = vrcp.f32 %v525_v33 }
 0x3a7   :  { %v1873_v34 = vpop.eup %1872 }
 0x3a8   :  { %v529_v37 = vmul.f32 %v1873_v34, %v439_v21 }
 0x408   :  { %v532_v35 = vpop.permute.xlu0 %531 }
 0x409   :  { %v534_v36 = vmul.f32 %v1873_v34, %v532_v35 }
 0x40b   :  { %536 = vrot.lane.b32.xlu1 %v534_v36, %s1958_s20 }
 0x47d   :  { %v537_v38 = vpop.permute.xlu1 %536 }
 0x47e   :  { %v539_v39 = vadd.f32 %v537_v38, %v529_v37 }
 0x480   :  { %1874 = vtanh.f32 %v539_v39 }
 0x48d   :  { %v1875_v40 = vpop.eup %1874 }
 0x48e   :  { %542 = vrot.lane.b32.xlu0 %v1875_v40, %s1957_s4 }
 0x500   :  { %v543_v41 = vpop.permute.xlu0 %542 }
 0x501   :  { %v545_v43 = vmul.f32 %v1873_v34, %v543_v41 }
 0x503   :  { %v1176_v44 = vrot.slane %v545_v43, %v2091_v17  ;;  %547 = vrot.lane.b32.xlu1 %v545_v43, %s1958_s20 }
 0x505   :  { %v1177_v46 = vcombine.high %v1176_v44, %v1176_v44  ;;  %v1184_v47 = vrot.slane %v1176_v44, %v2091_v17 }
 0x507   :  { %v1191_v49 = vrot.slane %v1177_v46, %v2091_v17  ;;  %v1328_v50 = vrot.slane %v1184_v47, %v2095_v28 }
 0x509   :  { %v1332_v52 = vrot.slane %v1191_v49, %v2095_v28  ;;  %v1395_v53 = vsel %vm339_vm2, %v1160_v48, %v1328_v50 }
 0x50b   :  { %v1396_v55 = vsel %vm339_vm2, %v1167_v51, %v1332_v52 }
 0x575   :  { %v548_v56 = vpop.permute.xlu1 %547 }
 0x576   :  { %1770 = vmatmul.mubr.msk.f32.vlgmr.msra.gmra.mxu0 %vm44_vm0, %v548_v56 }
 0x577   :  { %1784 = vmatpush3.msra.mxu0 %v2036_v7  ;;  %1791 = vmatprep.mubr.msk.f32.mxu0 %vm1955_vm1, %v1954_v1 }
 0x578   :  { %1785 = vmatprep.subr.mxu0 %v1954_v1 }
 0x579   :  { %1786 = vmatpush3.msra.mxu0 %v2044_v8 }
 0x57a   :  { %1787 = vmatprep.subr.mxu0 %v1954_v1 }
 0x57b   :  { %1788 = vmatpush3.msra.mxu0 %v2054_v9 }
 0x57c   :  { %1789 = vmatprep.subr.mxu0 %v1954_v1 }
 0x57d   :  { %1790 = vmatpush3.msra.mxu0 %v2063_v10 }
 0x57e   :  { %1805 = vmatprep.subr.mxu0 %v1954_v1 }
 0x636   :  { %v617_v57 = vpop.f32.mrf.mxu0 }
 0x637   :  { %v621_v59 = vadd.f32 %v617_v57, %v2117_v58 }
 0x638   :  { %v1771_v60 = vpop.f32.mrf.mxu0 }
 0x639   :  { %1876 = vtanh.f32 %v621_v59  ;;  %v1643_v63 = vmul.f32 -1.442695, %v621_v59 }
 0x63b   :  { %1878 = vpow2.f32 %v1643_v63 }
 0x646   :  { %v1877_v61 = vpop.eup %1876 }
 0x647   :  { %631 = vrot.lane.b32.xlu0 %v1877_v61, %s1957_s4 }
 0x648   :  { %v1879_v0 = vpop.eup %1878 }
 0x649   :  { %v625_v2 = vadd.f32 1.0, %v1879_v0 }
 0x64b   :  { %1880 = vrcp.f32 %v625_v2 }
 0x658   :  { %v1881_v5 = vpop.eup %1880 }
 0x659   :  { %v629_v13 = vmul.f32 %v1881_v5, %v539_v39 }
 0x6b9   :  { %v632_v11 = vpop.permute.xlu0 %631 }
 0x6ba   :  { %v634_v12 = vmul.f32 %v1881_v5, %v632_v11 }
 0x6bc   :  { %636 = vrot.lane.b32.xlu1 %v634_v12, %s1958_s20 }
 0x72e   :  { %v637_v14 = vpop.permute.xlu1 %636 }
 0x72f   :  { %v639_v15 = vadd.f32 %v637_v14, %v629_v13 }
 0x731   :  { %1882 = vtanh.f32 %v639_v15 }
 0x73e   :  { %v1883_v58 = vpop.eup %1882 }
 0x73f   :  { %642 = vrot.lane.b32.xlu0 %v1883_v58, %s1957_s4 }
 0x7b1   :  { %v643_v16 = vpop.permute.xlu0 %642 }
 0x7b2   :  { %v645_v18 = vmul.f32 %v1881_v5, %v643_v16 }
 0x7b4   :  { %v1198_v19 = vrot.slane %v645_v18, %v2091_v17  ;;  %647 = vrot.lane.b32.xlu1 %v645_v18, %s1958_s20 }
 0x7b6   :  { %v1199_v20 = vcombine.high %v1198_v19, %v1198_v19  ;;  %v1206_v21 = vrot.slane %v1198_v19, %v2091_v17 }
 0x7b8   :  { %v1213_v22 = vrot.slane %v1199_v20, %v2091_v17  ;;  %v1338_v23 = vrot.slane %v1206_v21, %v2095_v28 }
 0x7ba   :  { %v1342_v24 = vrot.slane %v1213_v22, %v2095_v28  ;;  %v1398_v25 = vsel %vm1397_vm3, %v1395_v53, %v1338_v23 }
 0x7bc   :  { %v1399_v26 = vsel %vm1397_vm3, %v1396_v55, %v1342_v24 }
 0x826   :  { %v648_v27 = vpop.permute.xlu1 %647 }
 0x827   :  { %1781 = vmatmul.mubr.msk.f32.vlgmr.msra.gmra.mxu1 %vm44_vm0, %v648_v27 }
 0x828   :  { %1795 = vmatpush3.msra.mxu1 %v2036_v7  ;;  %1802 = vmatprep.mubr.msk.f32.mxu1 %vm1955_vm1, %v1954_v1 }
 0x829   :  { %1796 = vmatprep.subr.mxu1 %v1954_v1 }
 0x82a   :  { %1797 = vmatpush3.msra.mxu1 %v2044_v8 }
 0x82b   :  { %1798 = vmatprep.subr.mxu1 %v1954_v1 }
 0x82c   :  { %1799 = vmatpush3.msra.mxu1 %v2054_v9 }
 0x82d   :  { %1800 = vmatprep.subr.mxu1 %v1954_v1 }
 0x82e   :  { %1801 = vmatpush3.msra.mxu1 %v2063_v10 }
 0x82f   :  { %1816 = vmatprep.subr.mxu1 %v1954_v1 }
 0x8e7   :  { %v717_v29 = vpop.f32.mrf.mxu1 }
 0x8e8   :  { %v721_v30 = vadd.f32 %v717_v29, %v2122_v62 }
 0x8e9   :  { %v1782_v31 = vpop.f32.mrf.mxu1 }
 0x8ea   :  { %1884 = vtanh.f32 %v721_v30  ;;  %v1645_v33 = vmul.f32 -1.442695, %v721_v30 }
 0x8ec   :  { %1886 = vpow2.f32 %v1645_v33 }
 0x8f7   :  { %v1885_v32 = vpop.eup %1884 }
 0x8f8   :  { %731 = vrot.lane.b32.xlu0 %v1885_v32, %s1957_s4 }
 0x8f9   :  { %v1887_v34 = vpop.eup %1886 }
 0x8fa   :  { %v725_v35 = vadd.f32 1.0, %v1887_v34 }
 0x8fc   :  { %1888 = vrcp.f32 %v725_v35 }
 0x909   :  { %v1889_v36 = vpop.eup %1888 }
 0x90a   :  { %v729_v39 = vmul.f32 %v1889_v36, %v639_v15 }
 0x96a   :  { %v732_v37 = vpop.permute.xlu0 %731 }
 0x96b   :  { %v734_v38 = vmul.f32 %v1889_v36, %v732_v37 }
 0x96d   :  { %736 = vrot.lane.b32.xlu1 %v734_v38, %s1958_s20 }
 0x9df   :  { %v737_v40 = vpop.permute.xlu1 %736 }
 0x9e0   :  { %v739_v41 = vadd.f32 %v737_v40, %v729_v39 }
 0x9e2   :  { %1890 = vtanh.f32 %v739_v41 }
 0x9ef   :  { %v1891_v62 = vpop.eup %1890 }
 0x9f0   :  { %742 = vrot.lane.b32.xlu0 %v1891_v62, %s1957_s4 }
 0xa62   :  { %v743_v42 = vpop.permute.xlu0 %742 }
 0xa63   :  { %v745_v43 = vmul.f32 %v1889_v36, %v743_v42 }
 0xa65   :  { %v1220_v44 = vrot.slane %v745_v43, %v2091_v17  ;;  %747 = vrot.lane.b32.xlu1 %v745_v43, %s1958_s20 }
 0xa67   :  { %v1221_v45 = vcombine.high %v1220_v44, %v1220_v44  ;;  %v1228_v46 = vrot.slane %v1220_v44, %v2091_v17 }
 0xa69   :  { %v1235_v47 = vrot.slane %v1221_v45, %v2091_v17  ;;  %v1348_v48 = vrot.slane %v1228_v46, %v2095_v28 }
 0xa6b   :  { %v1352_v49 = vrot.slane %v1235_v47, %v2095_v28  ;;  %v1401_v50 = vsel %vm1400_vm4, %v1398_v25, %v1348_v48 }
 0xa6d   :  { %v1402_v51 = vsel %vm1400_vm4, %v1399_v26, %v1352_v49 }
 0xad7   :  { %v748_v52 = vpop.permute.xlu1 %747 }
 0xad8   :  { %1792 = vmatmul.mubr.msk.f32.vlgmr.msra.gmra.mxu0 %vm44_vm0, %v748_v52 }
 0xad9   :  { %1806 = vmatpush3.msra.mxu0 %v2036_v7  ;;  %1813 = vmatprep.mubr.msk.f32.mxu0 %vm1955_vm1, %v1954_v1 }
 0xada   :  { %1807 = vmatprep.subr.mxu0 %v1954_v1 }
 0xadb   :  { %1808 = vmatpush3.msra.mxu0 %v2044_v8 }
 0xadc   :  { %1809 = vmatprep.subr.mxu0 %v1954_v1 }
 0xadd   :  { %1810 = vmatpush3.msra.mxu0 %v2054_v9 }
 0xade   :  { %1811 = vmatprep.subr.mxu0 %v1954_v1 }
 0xadf   :  { %1812 = vmatpush3.msra.mxu0 %v2063_v10 }
 0xae0   :  { %1827 = vmatprep.subr.mxu0 %v1954_v1 }
 0xb98   :  { %v817_v53 = vpop.f32.mrf.mxu0 }
 0xb99   :  { %v821_v55 = vadd.f32 %v817_v53, %v2112_v54 }
 0xb9a   :  { %v1793_v56 = vpop.f32.mrf.mxu0 }
 0xb9b   :  { %1892 = vtanh.f32 %v821_v55  ;;  %v1647_v59 = vmul.f32 -1.442695, %v821_v55 }
 0xb9d   :  { %1894 = vpow2.f32 %v1647_v59 }
 0xba8   :  { %v1893_v57 = vpop.eup %1892 }
 0xba9   :  { %831 = vrot.lane.b32.xlu0 %v1893_v57, %s1957_s4 }
 0xbaa   :  { %v1895_v60 = vpop.eup %1894 }
 0xbab   :  { %v825_v61 = vadd.f32 1.0, %v1895_v60 }
 0xbad   :  { %1896 = vrcp.f32 %v825_v61 }
 0xbba   :  { %v1897_v63 = vpop.eup %1896 }
 0xbbb   :  { %v829_v5 = vmul.f32 %v1897_v63, %v739_v41 }
 0xc1b   :  { %v832_v0 = vpop.permute.xlu0 %831 }
 0xc1c   :  { %v834_v2 = vmul.f32 %v1897_v63, %v832_v0 }
 0xc1e   :  { %836 = vrot.lane.b32.xlu1 %v834_v2, %s1958_s20 }
 0xc90   :  { %v837_v11 = vpop.permute.xlu1 %836 }
 0xc91   :  { %v839_v12 = vadd.f32 %v837_v11, %v829_v5 }
 0xc93   :  { %1898 = vtanh.f32 %v839_v12 }
 0xca0   :  { %v1899_v54 = vpop.eup %1898 }
 0xca1   :  { %842 = vrot.lane.b32.xlu0 %v1899_v54, %s1957_s4 }
 0xd13   :  { %v843_v13 = vpop.permute.xlu0 %842 }
 0xd14   :  { %v845_v14 = vmul.f32 %v1897_v63, %v843_v13 }
 0xd16   :  { %v1242_v15 = vrot.slane %v845_v14, %v2091_v17  ;;  %847 = vrot.lane.b32.xlu1 %v845_v14, %s1958_s20 }
 0xd18   :  { %v1243_v58 = vcombine.high %v1242_v15, %v1242_v15  ;;  %v1250_v16 = vrot.slane %v1242_v15, %v2091_v17 }
 0xd1a   :  { %v1257_v18 = vrot.slane %v1243_v58, %v2091_v17  ;;  %v1358_v19 = vrot.slane %v1250_v16, %v2095_v28 }
 0xd1c   :  { %v1362_v20 = vrot.slane %v1257_v18, %v2095_v28  ;;  %v1404_v21 = vsel %vm1403_vm5, %v1401_v50, %v1358_v19 }
 0xd1e   :  { %v1405_v22 = vsel %vm1403_vm5, %v1402_v51, %v1362_v20 }
 0xd88   :  { %v848_v23 = vpop.permute.xlu1 %847 }
 0xd89   :  { %1803 = vmatmul.mubr.msk.f32.vlgmr.msra.gmra.mxu1 %vm44_vm0, %v848_v23 }
 0xd8a   :  { %1817 = vmatpush3.msra.mxu1 %v2036_v7  ;;  %1824 = vmatprep.mubr.msk.f32.mxu1 %vm1955_vm1, %v1954_v1 }
 0xd8b   :  { %1818 = vmatprep.subr.mxu1 %v1954_v1 }
 0xd8c   :  { %1819 = vmatpush3.msra.mxu1 %v2044_v8 }
 0xd8d   :  { %1820 = vmatprep.subr.mxu1 %v1954_v1 }
 0xd8e   :  { %1821 = vmatpush3.msra.mxu1 %v2054_v9 }
 0xd8f   :  { %1822 = vmatprep.subr.mxu1 %v1954_v1 }
 0xd90   :  { %1823 = vmatpush3.msra.mxu1 %v2063_v10 }
 0xd91   :  { %1838 = vmatprep.subr.mxu1 %v1954_v1 }
 0xe49   :  { %v917_v24 = vpop.f32.mrf.mxu1 }
 0xe4a   :  { %v921_v7 = vadd.f32 %v917_v24, %v2126_v3 }
 0xe4b   :  { %v1804_v25 = vpop.f32.mrf.mxu1 }
 0xe4c   :  { %1900 = vtanh.f32 %v921_v7  ;;  %v1649_v27 = vmul.f32 -1.442695, %v921_v7 }
 0xe4e   :  { %1902 = vpow2.f32 %v1649_v27 }
 0xe59   :  { %v1901_v26 = vpop.eup %1900 }
 0xe5a   :  { %931 = vrot.lane.b32.xlu0 %v1901_v26, %s1957_s4 }
 0xe5b   :  { %v1903_v8 = vpop.eup %1902 }
 0xe5c   :  { %v925_v29 = vadd.f32 1.0, %v1903_v8  ;;  %v1416_v8 = vld [vmem:[%s2320_s1 + $0x8] sm:$0xff] }
 0xe5d   :  { %vm1524_vm9 = vcmp.gt.f32.partialorder %v1416_v8, 0.5 }
 0xe5e   :  { %1904 = vrcp.f32 %v925_v29 }
 0xe6b   :  { %v1905_v9 = vpop.eup %1904 }
 0xe6c   :  { %v929_v10 = vmul.f32 %v1905_v9, %v839_v12 }
 0xecc   :  { %v932_v30 = vpop.permute.xlu0 %931 }
 0xecd   :  { %v934_v31 = vmul.f32 %v1905_v9, %v932_v30  ;;  %v1420_v30 = vld [vmem:[%s2324_s5 + $0x18] sm:$0xff] }
 0xecf   :  { %936 = vrot.lane.b32.xlu1 %v934_v31, %s1958_s20  ;;  %v1419_v31 = vld [vmem:[%s2324_s5 + $0x10] sm:$0xff] }
 0xf41   :  { %v937_v32 = vpop.permute.xlu1 %936 }
 0xf42   :  { %v939_v33 = vadd.f32 %v937_v32, %v929_v10  ;;  %v1418_v10 = vld [vmem:[%s2324_s5 + $0x8] sm:$0xff]  ;;  %v1417_v32 = vld [vmem:[%s2324_s5] sm:$0xff] }
 0xf44   :  { %1906 = vtanh.f32 %v939_v33 }
 0xf51   :  { %v1907_v3 = vpop.eup %1906 }
 0xf52   :  { %942 = vrot.lane.b32.xlu0 %v1907_v3, %s1957_s4 }
 0xfc4   :  { %v943_v34 = vpop.permute.xlu0 %942 }
 0xfc5   :  { %v945_v35 = vmul.f32 %v1905_v9, %v943_v34 }
 0xfc7   :  { %v1264_v36 = vrot.slane %v945_v35, %v2091_v17  ;;  %947 = vrot.lane.b32.xlu1 %v945_v35, %s1958_s20 }
 0xfc9   :  { %v1265_v37 = vcombine.high %v1264_v36, %v1264_v36  ;;  %v1272_v38 = vrot.slane %v1264_v36, %v2091_v17 }
 0xfcb   :  { %v1279_v39 = vrot.slane %v1265_v37, %v2091_v17  ;;  %v1368_v40 = vrot.slane %v1272_v38, %v2095_v28 }
 0xfcd   :  { %v1372_v41 = vrot.slane %v1279_v39, %v2095_v28  ;;  %v1407_v62 = vsel %vm1406_vm6, %v1404_v21, %v1368_v40  ;;  %v1959_v21 = vmov 0  }
 0xfce   :  { %1858 = vset.pattern.permute.xlu1 %v1959_v21  ;;  %1859 = vset.pattern.permute.xlu0 %v1959_v21  ;;  %v1525_v9 = vsel %vm1524_vm9, 1, %v1959_v21 }
 0xfcf   :  { %v1408_v42 = vsel %vm1406_vm6, %v1405_v22, %v1372_v41  ;;  %v1415_v22 = vld [vmem:[%s2320_s1] sm:$0xff] }
 0xfd0   :  { %vm1422_vm8 = vcmp.gt.f32.partialorder %v1415_v22, 0.5 }
 0xfd1   :  { %v1423_v7 = vsel %vm1422_vm8, 1, %v1959_v21 }
0x1039   :  { %v948_v43 = vpop.permute.xlu1 %947 }
0x103a   :  { %1814 = vmatmul.mubr.msk.f32.vlgmr.msra.gmra.mxu0 %vm44_vm0, %v948_v43 }
0x103b   :  { %1835 = vmatprep.mubr.msk.f32.mxu0 %vm1955_vm1, %v1954_v1  ;;  %1828 = vmatpush3.msra.mxu0 %v1420_v30 }
0x103c   :  { %1829 = vmatprep.subr.mxu0 %v1954_v1 }
0x103d   :  { %1830 = vmatpush3.msra.mxu0 %v1419_v31 }
0x103e   :  { %1831 = vmatprep.subr.mxu0 %v1954_v1 }
0x103f   :  { %1832 = vmatpush3.msra.mxu0 %v1418_v10 }
0x1040   :  { %1833 = vmatprep.subr.mxu0 %v1954_v1 }
0x1041   :  { %1834 = vmatpush3.msra.mxu0 %v1417_v32 }
0x10fa   :  { %v1017_v44 = vpop.f32.mrf.mxu0 }
0x10fb   :  { %v1021_v45 = vadd.f32 %v1017_v44, %v2129_v4 }
0x10fc   :  { %v1815_v46 = vpop.f32.mrf.mxu0 }
0x10fd   :  { %1908 = vtanh.f32 %v1021_v45  ;;  %v1651_v48 = vmul.f32 -1.442695, %v1021_v45  ;;  %v1654_v45 = vld [vmem:[%s2325_s6] ss:$0 sm:$0xff]  ;;  %s1960_s6 = smov [#allocation2]  }
0x10fe   :  { %s1625_s10 = sshll.u32 %s1960_s6, 4  ;;  %s1626_s10 = int_to_ptr.vmem [resolvable:$true] %s1625_s10 }
0x10ff   :  { %1910 = vpow2.f32 %v1651_v48  ;;  %s1932_s11 = scalar_lea.vmem %s1626_s10, 256  ;;  %p1937_p1 = scmp.lt.s32.totalorder %s1626_s10, %s1626_s10 }
0x1100   :  { %p1933_p0 = scmp.ne.s32.totalorder %s1626_s10, %s1932_s11  ;;  %p1938_p2 = scmp.lt.s32.totalorder %s1932_s11, %s1932_s11 }
0x1102   :  { %p1939_p3 = por %p1938_p2, %p1937_p1 }
0x1104   :  { %p1940_p4 = pnand %p1939_p3, %p1933_p0 }
0x110a   :  { %v1909_v47 = vpop.eup %1908 }
0x110b   :  { %1031 = vrot.lane.b32.xlu0 %v1909_v47, %s1957_s4 }
0x110c   :  { %v1911_v49 = vpop.eup %1910 }
0x110d   :  { %v1025_v50 = vadd.f32 1.0, %v1911_v49 }
0x110f   :  { %1912 = vrcp.f32 %v1025_v50 }
0x111c   :  { %v1913_v51 = vpop.eup %1912 }
0x111d   :  { %v1029_v55 = vmul.f32 %v1913_v51, %v939_v33 }
0x117d   :  { %v1032_v52 = vpop.permute.xlu0 %1031 }
0x117e   :  { %v1034_v53 = vmul.f32 %v1913_v51, %v1032_v52 }
0x1180   :  { %1036 = vrot.lane.b32.xlu1 %v1034_v53, %s1958_s20 }
0x11f2   :  { %v1037_v56 = vpop.permute.xlu1 %1036 }
0x11f3   :  { %v1039_v57 = vadd.f32 %v1037_v56, %v1029_v55 }
0x11f5   :  { %1914 = vtanh.f32 %v1039_v57 }
0x1202   :  { %v1915_v4 = vpop.eup %1914 }
0x1203   :  { %1042 = vrot.lane.b32.xlu0 %v1915_v4, %s1957_s4 }
0x1275   :  { %v1043_v59 = vpop.permute.xlu0 %1042 }
0x1276   :  { %v1045_v60 = vmul.f32 %v1913_v51, %v1043_v59 }
0x1278   :  { %v1286_v61 = vrot.slane %v1045_v60, %v2091_v17  ;;  %1047 = vrot.lane.b32.xlu1 %v1045_v60, %s1958_s20 }
0x127a   :  { %v1287_v63 = vcombine.high %v1286_v61, %v1286_v61  ;;  %v1294_v0 = vrot.slane %v1286_v61, %v2091_v17 }
0x127c   :  { %v1301_v2 = vrot.slane %v1287_v63, %v2091_v17  ;;  %v1378_v5 = vrot.slane %v1294_v0, %v2095_v28 }
0x127e   :  { %v1382_v11 = vrot.slane %v1301_v2, %v2095_v28  ;;  %v2261_v12 = vsel %vm1409_vm7, %v1407_v62, %v1378_v5 }
0x1280   :  { %v2263_v54 = vsel %vm1409_vm7, %v1408_v42, %v1382_v11 }
0x12ea   :  { %v1048_v13 = vpop.permute.xlu1 %1047 }
0x12eb   :  { %1825 = vmatmul.mubr.msk.f32.vlgmr.msra.gmra.mxu1 %vm44_vm0, %v1048_v13 }
0x12ec   :  { %1846 = vmatprep.mubr.msk.f32.mxu1 %vm1955_vm1, %v1954_v1  ;;  %1839 = vmatpush3.msra.mxu1 %v1420_v30 }
0x12ed   :  { %1840 = vmatprep.subr.mxu1 %v1954_v1 }
0x12ee   :  { %1841 = vmatpush3.msra.mxu1 %v1419_v31 }
0x12ef   :  { %1842 = vmatprep.subr.mxu1 %v1954_v1 }
0x12f0   :  { %1843 = vmatpush3.msra.mxu1 %v1418_v10 }
0x12f1   :  { %1844 = vmatprep.subr.mxu1 %v1954_v1 }
0x12f2   :  { %1845 = vmatpush3.msra.mxu1 %v1417_v32 }
0x13ab   :  { %v1117_v14 = vpop.f32.mrf.mxu1 }
0x13ac   :  { %v1121_v15 = vadd.f32 %v1117_v14, %v2133_v6 }
0x13ad   :  { %v1826_v58 = vpop.f32.mrf.mxu1 }
0x13ae   :  { %1916 = vtanh.f32 %v1121_v15  ;;  %v1653_v18 = vmul.f32 -1.442695, %v1121_v15 }
0x13b0   :  { %1918 = vpow2.f32 %v1653_v18 }
0x13bb   :  { %v1917_v16 = vpop.eup %1916 }
0x13bc   :  { %1131 = vrot.lane.b32.xlu0 %v1917_v16, %s1957_s4 }
0x13bd   :  { %v1919_v19 = vpop.eup %1918 }
0x13be   :  { %v1125_v20 = vadd.f32 1.0, %v1919_v19 }
0x13c0   :  { %1920 = vrcp.f32 %v1125_v20 }
0x13cd   :  { %v1921_v23 = vpop.eup %1920 }
0x13ce   :  { %v1129_v25 = vmul.f32 %v1921_v23, %v1039_v57 }
0x142e   :  { %v1132_v24 = vpop.permute.xlu0 %1131 }
0x142f   :  { %v1134_v6 = vmul.f32 %v1921_v23, %v1132_v24 }
0x1431   :  { %1136 = vrot.lane.b32.xlu1 %v1134_v6, %s1958_s20 }
0x1435   :  { %1425 = vperm.xlu1 %1858, %v1423_v7  }
0x14a3   :  { %v1137_v26 = vpop.permute.xlu1 %1136 }
0x14a4   :  { %v1139_v27 = vadd.f32 %v1137_v26, %v1129_v25 }
0x14a6   :  { %1922 = vtanh.f32 %v1139_v27 }
0x14b0   :  { %v1426_v35 = vpop.permute.xlu1 %1425 }
0x14b1   :  { %vm1427_vm11 = vcmp.eq.s32.totalorder %v1426_v35, 1 }
0x14b3   :  { %v1923_v29 = vpop.eup %1922 }
0x14b4   :  { %1142 = vrot.lane.b32.xlu0 %v1923_v29, %s1957_s4 }
0x14b8   :  { %1527 = vperm.xlu0 %1859, %v1525_v9  }
0x1526   :  { %v1143_v33 = vpop.permute.xlu0 %1142 }
0x1527   :  { %v1145_v3 = vmul.f32 %v1921_v23, %v1143_v33 }
0x1529   :  { %v1309_v34 = vrot.slane %v1145_v3, %v2091_v17 }
0x152b   :  { %v1310_v36 = vcombine.high %v1309_v34, %v1309_v34  ;;  %v1317_v37 = vrot.slane %v1309_v34, %v2091_v17 }
0x152d   :  { %v1324_v38 = vrot.slane %v1310_v36, %v2091_v17  ;;  %v1388_v39 = vrot.slane %v1317_v37, %v2095_v28 }
0x152f   :  { %v1413_v40 = vsel %vm1412_vm10, %v2261_v12, %v1388_v39  ;;  %v1392_v1 = vrot.slane %v1324_v38, %v2095_v28 }
0x1530   :  { %v1428_v41 = vsel %vm1427_vm11, %v1413_v40, -1e+18 }
0x1531   :  { %1436 = vrot.lane.b32.xlu1 %v1428_v41, %s1958_s20  ;;  %v1414_v42 = vsel %vm1412_vm10, %v2263_v54, %v1392_v1 }
0x1533   :  { %v1528_v62 = vpop.permute.xlu0 %1527 }
0x1534   :  { %vm1529_vm12 = vcmp.eq.s32.totalorder %v1528_v62, 1 }
0x1535   :  { %v1530_v43 = vsel %vm1529_vm12, %v1414_v42, -1e+18 }
0x1536   :  { %1532 = vrot.lane.b32.xlu1 %v1530_v43, %s1958_s20 }
0x15a3   :  { %v1437_v44 = vpop.permute.xlu1 %1436 }
0x15a4   :  { %1836 = vmatmul.mubr.msk.f32.vlgmr.msra.gmra.mxu0 %vm44_vm0, %v1437_v44 }
0x15a8   :  { %v1533_v17 = vpop.permute.xlu1 %1532 }
0x15a9   :  { %1847 = vmatmul.mubr.msk.f32.vlgmr.msra.gmra.mxu1 %vm44_vm0, %v1533_v17 }
0x1664   :  { %v1506_v28 = vpop.f32.mrf.mxu0 }
0x1665   :  { %v1507_v46 = vadd.f32 %v1654_v45, %v1506_v28 }
0x1666   :  { %v1837_v47 = vpop.f32.mrf.mxu0 }
0x1667   :  { %v1511_v48 = vsel %vm1510_vm13, %v1507_v46, -inf }
0x1668   :  { %1512 = vmax.xlane.f32.xlu0 %v1511_v48 }
0x1669   :  { %v1602_v49 = vpop.f32.mrf.mxu1 }
0x166a   :  { %v1603_v50 = vadd.f32 %v1654_v45, %v1602_v49 }
0x166b   :  { %v1848_v51 = vpop.f32.mrf.mxu1 }
0x166c   :  { %v1606_v52 = vsel %vm1510_vm13, %v1603_v50, -inf }
0x166d   :  { %1607 = vmax.xlane.f32.xlu1 %v1606_v52 }
0x16f1   :  { %v1513_v53 = vpop.xlane.xlu0 %1512 }
0x16f2   :  { %v1514_v55 = vsub.f32 %v1507_v46, %v1513_v53 }
0x16f4   :  { %v1515_v56 = vmul.f32 1.442695, %v1514_v55 }
0x16f6   :  { %1924 = vpow2.f32 %v1515_v56  ;;  %v1608_v57 = vpop.xlane.xlu1 %1607 }
0x16f7   :  { %v1609_v4 = vsub.f32 %v1603_v50, %v1608_v57 }
0x16f9   :  { %v1610_v59 = vmul.f32 1.442695, %v1609_v4 }
0x16fb   :  { %1926 = vpow2.f32 %v1610_v59 }
0x1703   :  { %v1925_v60 = vpop.eup %1924 }
0x1704   :  { %v1517_v61 = vsel %vm1510_vm13, %v1925_v60, 0.0 }
0x1705   :  { %1518 = vadd.xlane.f32.xlu0 %v1517_v61 }
0x1708   :  { %v1927_v63 = vpop.eup %1926 }
0x1709   :  { %v1612_v0 = vsel %vm1510_vm13, %v1927_v63, 0.0 }
0x170a   :  { %1613 = vadd.xlane.f32.xlu0 %v1612_v0 }
0x178e   :  { %v1519_v2 = vpop.xlane.xlu0 %1518 }
0x178f   :  { %1928 = vlog2.f32 %v1519_v2 }
0x1793   :  { %v1614_v5 = vpop.xlane.xlu0 %1613 }
0x1794   :  { %1930 = vlog2.f32 %v1614_v5 }
0x179c   :  { %v1929_v11 = vpop.eup %1928 }
0x179d   :  { %v1521_v12 = vmul.f32 0.6931472, %v1929_v11 }
0x179f   :  { %v1522_v54 = vsub.f32 %v1514_v55, %v1521_v12 }
0x17a1   :  { %v1931_v13 = vpop.eup %1930  ;;  %1523 = vst.msk [vmem:[#allocation2] sm:$0xff] %vm1510_vm13, %v1522_v54 }
0x17a2   :  { %v1616_v14 = vmul.f32 0.6931472, %v1931_v13 }
0x17a4   :  { %v1617_v15 = vsub.f32 %v1609_v4, %v1616_v14 }
0x17a6   :  { %1619 = vst.msk [vmem:[#allocation2 + $0x8] sm:$0xff] %vm1510_vm13, %v1617_v15 }
0x17a7   :  { %1943 = shalt.err (!%p1940_p4)
}
0x17a8   :  { %s1961_s12 = smov 128   ;;  %s1962_s2 = smov 8  }
0x17a9   :  { %1631 = dma.vmem_to_hbm [thread:$0]  %s1626_s10, 256, %s2326_s7, [#allocation3], %s1961_s12, %s1961_s12, %s1962_s2  }
0x17aa   :  { %1952 = dma.done.wait [#allocation3], 256  }
0x17ab   :  { %1953 = vsyncadd [#allocation3], 4294967040 }
0x17ac   :  { %1635 = vsyncpa [#allocation3], 1 }

</bundles_post_ra>
